<compile_context>
chip_gen: v5e
topology: v5e:2x2
jax: 0.10.0
libtpu: 0.0.40
codegen_flags: <defaults>
</compile_context>

<pallas_src>
import functools

import jax
import jax.numpy as jnp
from jax.experimental import pallas as pl
from jax.experimental.pallas import tpu as pltpu


def _round_up(x, m):
    return (x + m - 1) // m * m


# ----------------------------------------------------------------------------
# Tiled bf16 GEMM (f32 accumulation), with optional fused BN-stats epilogue
# ----------------------------------------------------------------------------
def _gemm_tiles(Mp, K, N):
    tm = min(512, Mp)
    if N % 256 == 0:
        tn = 256
    elif N % 128 == 0:
        tn = 128
    else:
        tn = N           # full-dim block (allowed by the (8,128) rule)
    if K <= 2048:
        tk = K
    else:
        tk = next((c for c in (2048, 1024, 512, 256, 128) if K % c == 0), K)
    return tm, tn, tk


def _matmul_kernel(a_ref, b_ref, o_ref, acc_ref):
    @pl.when(pl.program_id(2) == 0)
    def _():
        acc_ref[...] = jnp.zeros_like(acc_ref)

    acc_ref[...] += jnp.dot(a_ref[...], b_ref[...],
                            preferred_element_type=jnp.float32)

    @pl.when(pl.program_id(2) == pl.num_programs(2) - 1)
    def _():
        o_ref[...] = acc_ref[...].astype(o_ref.dtype)


def _matmul_stats_kernel(a_ref, b_ref, o_ref, sum_ref, sq_ref, acc_ref, *,
                         tm, m_limit, mask_rows):
    @pl.when(pl.program_id(2) == 0)
    def _():
        acc_ref[...] = jnp.zeros_like(acc_ref)

    acc_ref[...] += jnp.dot(a_ref[...], b_ref[...],
                            preferred_element_type=jnp.float32)

    @pl.when(pl.program_id(2) == pl.num_programs(2) - 1)
    def _():
        acc = acc_ref[...]
        o_ref[...] = acc.astype(o_ref.dtype)
        if mask_rows:  # mask stale rows of a clipped last M tile (stats only)
            rows = (jax.lax.broadcasted_iota(jnp.int32, (acc.shape[0], 1), 0)
                    + pl.program_id(0) * tm)
            acc = jnp.where(rows < m_limit, acc, 0.0)
        sum_ref[...] = jnp.sum(acc, axis=0)[None, None, :]
        sq_ref[...] = jnp.sum(acc * acc, axis=0)[None, None, :]


def pallas_matmul(a, b, out_dtype=jnp.float32):
    """a: (M, K), b: (K, N) -> (M, N).  bf16 MXU GEMM, f32 accumulation."""
    M, K = a.shape
    K2, N = b.shape
    assert K == K2
    a = a.astype(jnp.bfloat16)
    b = b.astype(jnp.bfloat16)

    Mp = _round_up(M, 8)
    if Mp != M:  # tiny tensors only (e.g. fc with batch < 8)
        a = jnp.pad(a, ((0, Mp - M), (0, 0)))

    tm, tn, tk = _gemm_tiles(Mp, K, N)
    grid = (pl.cdiv(Mp, tm), N // tn, pl.cdiv(K, tk))
    out = pl.pallas_call(
        _matmul_kernel,
        out_shape=jax.ShapeDtypeStruct((Mp, N), out_dtype),
        grid_spec=pltpu.PrefetchScalarGridSpec(
            num_scalar_prefetch=0,
            grid=grid,
            in_specs=[
                pl.BlockSpec((tm, tk), lambda i, j, k: (i, k)),
                pl.BlockSpec((tk, tn), lambda i, j, k: (k, j)),
            ],
            out_specs=pl.BlockSpec((tm, tn), lambda i, j, k: (i, j)),
            scratch_shapes=[pltpu.VMEM((tm, tn), jnp.float32)],
        ),
        compiler_params=pltpu.CompilerParams(
            dimension_semantics=("parallel", "parallel", "arbitrary")),
    )(a, b)
    return out[:M] if Mp != M else out


def pallas_matmul_stats(a, b, out_dtype=jnp.bfloat16):
    """Like pallas_matmul but also returns per-column (channel) sum and
    sum-of-squares of the f32 accumulator, for fused BatchNorm statistics.

    Returns (out (M, N) out_dtype, col_sum (N,) f32, col_sumsq (N,) f32).
    Zero-padded rows contribute exactly 0 to the sums."""
    M, K = a.shape
    K2, N = b.shape
    assert K == K2
    a = a.astype(jnp.bfloat16)
    b = b.astype(jnp.bfloat16)

    Mp = _round_up(M, 8)
    if Mp != M:
        a = jnp.pad(a, ((0, Mp - M), (0, 0)))

    tm, tn, tk = _gemm_tiles(Mp, K, N)
    gm, gn, gk = pl.cdiv(Mp, tm), N // tn, pl.cdiv(K, tk)
    mask_rows = (Mp % tm) != 0

    out, s_part, sq_part = pl.pallas_call(
        functools.partial(_matmul_stats_kernel, tm=tm, m_limit=Mp,
                          mask_rows=mask_rows),
        out_shape=(jax.ShapeDtypeStruct((Mp, N), out_dtype),
                   jax.ShapeDtypeStruct((gm, 1, N), jnp.float32),
                   jax.ShapeDtypeStruct((gm, 1, N), jnp.float32)),
        grid_spec=pltpu.PrefetchScalarGridSpec(
            num_scalar_prefetch=0,
            grid=(gm, gn, gk),
            in_specs=[
                pl.BlockSpec((tm, tk), lambda i, j, k: (i, k)),
                pl.BlockSpec((tk, tn), lambda i, j, k: (k, j)),
            ],
            out_specs=(pl.BlockSpec((tm, tn), lambda i, j, k: (i, j)),
                       pl.BlockSpec((1, 1, tn), lambda i, j, k: (i, 0, j)),
                       pl.BlockSpec((1, 1, tn), lambda i, j, k: (i, 0, j))),
            scratch_shapes=[pltpu.VMEM((tm, tn), jnp.float32)],
        ),
        compiler_params=pltpu.CompilerParams(
            dimension_semantics=("parallel", "parallel", "arbitrary")),
    )(a, b)

    if Mp != M:
        out = out[:M]
    # Tiny O(gm*N) glue reduction over the per-M-tile partials.
    return out, s_part.sum(axis=(0, 1)), sq_part.sum(axis=(0, 1))


# ----------------------------------------------------------------------------
# Fused BatchNorm apply (train-mode batch stats) + residual + ReLU, tiled
# ----------------------------------------------------------------------------
def _bn_apply_kernel(*refs, relu, has_residual):
    if has_residual:
        x_ref, sc_ref, sh_ref, r_ref, o_ref = refs
    else:
        x_ref, sc_ref, sh_ref, o_ref = refs
    y = x_ref[...].astype(jnp.float32) * sc_ref[...] + sh_ref[...]
    if has_residual:
        y = y + r_ref[...].astype(jnp.float32)
    if relu:
        y = jnp.maximum(y, 0.0)
    o_ref[...] = y.astype(o_ref.dtype)


def bn_apply(x, col_sum, col_sq, count, gamma, beta, residual=None, relu=True,
             eps=1e-5, out_dtype=jnp.bfloat16):
    """x: (M, C) bf16 conv output; col_sum/col_sq: (C,) f32 from the fused GEMM
    epilogue; count: number of valid rows (N*Ho*Wo); gamma/beta: (C,) f32."""
    M, C = x.shape

    # Tiny O(C) glue: batch mean/var (biased, matching PyTorch train-mode
    # normalization) -> per-channel scale/shift.
    mean = col_sum / count
    var = jnp.maximum(col_sq / count - mean * mean, 0.0)
    scale = gamma * jax.lax.rsqrt(var + eps)
    shift = beta - mean * scale

    # Lane-dense folding: for C < 128 pack `fold` consecutive rows into the
    # lane dimension so stores are unmasked full vregs.
    fold = 1
    if C < 128 and 128 % C == 0 and M % (128 // C) == 0:
        fold = 128 // C
    Cf, Mf = C * fold, M // fold
    xf = x.reshape(Mf, Cf)
    rf = residual.reshape(Mf, Cf) if residual is not None else None
    scale_f = jnp.tile(scale, fold).reshape(1, Cf)
    shift_f = jnp.tile(shift, fold).reshape(1, Cf)

    Mp = _round_up(Mf, 8)
    if Mp != Mf:  # rare, tiny tensors only
        xf = jnp.pad(xf, ((0, Mp - Mf), (0, 0)))
        if rf is not None:
            rf = jnp.pad(rf, ((0, Mp - Mf), (0, 0)))

    tm = min(Mp, 1024)
    grid_m = pl.cdiv(Mp, tm)

    ins = [xf, scale_f, shift_f]
    in_specs = [pl.BlockSpec((tm, Cf), lambda i: (i, 0)),
                pl.BlockSpec((1, Cf), lambda i: (0, 0)),
                pl.BlockSpec((1, Cf), lambda i: (0, 0))]
    if rf is not None:
        ins.append(rf)
        in_specs.append(pl.BlockSpec((tm, Cf), lambda i: (i, 0)))

    y = pl.pallas_call(
        functools.partial(_bn_apply_kernel, relu=relu,
                          has_residual=rf is not None),
        out_shape=jax.ShapeDtypeStruct((Mp, Cf), out_dtype),
        grid_spec=pltpu.PrefetchScalarGridSpec(
            num_scalar_prefetch=0,
            grid=(grid_m,),
            in_specs=in_specs,
            out_specs=pl.BlockSpec((tm, Cf), lambda i: (i, 0))),
        compiler_params=pltpu.CompilerParams(
            dimension_semantics=("parallel",)),
    )(*ins)

    if Mp != Mf:
        y = y[:Mf]
    return y.reshape(M, C)


# ----------------------------------------------------------------------------
# MaxPool 3x3 stride 2 pad 1 (no 9x patch stack)
# ----------------------------------------------------------------------------
def _maxpool_h_kernel(x_ref, o_ref, *, Ho):
    x = x_ref[0]                                           # (Hp, Wo, C)
    y = jnp.maximum(jnp.maximum(x[:-2], x[1:-1]), x[2:])   # (2*Ho, Wo, C)
    # stride-2 row pick via a leading-dim reshape (no strided slice needed)
    y = y.reshape(Ho, 2, y.shape[1], y.shape[2])[:, 0]
    o_ref[0] = y


def maxpool_3x3_s2_p1(x):
    """x: NHWC (bf16), torch.nn.MaxPool2d(3, stride=2, padding=1)."""
    N, H, W, C = x.shape
    Ho = (H - 1) // 2 + 1
    Wo = (W - 1) // 2 + 1
    pad_h_extra = 1 if (H % 2 == 1) else 0
    xp = jnp.pad(x, ((0, 0), (1, 1 + pad_h_extra), (1, 1), (0, 0)),
                 constant_values=-jnp.inf)
    Hp = H + 2 + pad_h_extra
    # W-direction 3-tap max + stride-2 subsample: XLA fuses the three strided
    # slices + maximum into one pass (1 read + 1 write, no 9x materialization).
    wmax = jnp.maximum(
        jnp.maximum(xp[:, :, 0:2 * Wo - 1:2, :], xp[:, :, 1:2 * Wo:2, :]),
        xp[:, :, 2:2 * Wo + 1:2, :])                       # (N, Hp, Wo, C)
    out = pl.pallas_call(
        functools.partial(_maxpool_h_kernel, Ho=Ho),
        out_shape=jax.ShapeDtypeStruct((N, Ho, Wo, C), x.dtype),
        grid_spec=pltpu.PrefetchScalarGridSpec(
            num_scalar_prefetch=0,
            grid=(N,),
            in_specs=[pl.BlockSpec((1, Hp, Wo, C), lambda n: (n, 0, 0, 0))],
            out_specs=pl.BlockSpec((1, Ho, Wo, C), lambda n: (n, 0, 0, 0))),
        compiler_params=pltpu.CompilerParams(
            dimension_semantics=("parallel",)),
    )(wmax)
    return out


# ----------------------------------------------------------------------------
# Convolution: im2col (bf16 glue) + Pallas GEMM with fused BN stats
# ----------------------------------------------------------------------------
def _im2col(x, kh, kw, stride, pad):
    """x: NHWC -> (N*Ho*Wo, kh*kw*Cin) patches (kh-major, kw, then channel)."""
    # TODO(synk): fuse the patch gather into the GEMM (per-tap accumulation via
    # manual DMA of shifted windows) to avoid materializing the kh*kw-expanded
    # matrix in HBM; largest remaining bandwidth cost (49x for the 7x7 stem).
    N, H, W, C = x.shape
    Ho = (H + 2 * pad - kh) // stride + 1
    Wo = (W + 2 * pad - kw) // stride + 1
    if pad:
        x = jnp.pad(x, ((0, 0), (pad, pad), (pad, pad), (0, 0)))
    if kh == 1 and kw == 1:
        cols = x[:, ::stride, ::stride, :].reshape(N * Ho * Wo, C)
        return cols, Ho, Wo
    pats = []
    for i in range(kh):
        for j in range(kw):
            pats.append(x[:, i:i + stride * (Ho - 1) + 1:stride,
                          j:j + stride * (Wo - 1) + 1:stride, :])
    p = jnp.stack(pats, axis=3)                        # (N, Ho, Wo, kh*kw, C)
    return p.reshape(N * Ho * Wo, kh * kw * C), Ho, Wo


def conv2d_bn_stats(x, w, stride, pad):
    """x: NHWC (bf16), w: PyTorch-layout (Cout, Cin, kh, kw), no bias.
    Returns (y NHWC bf16, per-channel sum, per-channel sum-of-squares, count)."""
    Cout, Cin, kh, kw = w.shape
    N = x.shape[0]
    cols, Ho, Wo = _im2col(x, kh, kw, stride, pad)
    w2 = jnp.transpose(w, (2, 3, 1, 0)).reshape(kh * kw * Cin, Cout)
    y, s, sq = pallas_matmul_stats(cols, w2)           # bf16 out, f32 stats
    return y.reshape(N, Ho, Wo, Cout), s, sq, N * Ho * Wo


def basic_block(x, blk):
    """torchvision BasicBlock: conv3x3-bn-relu-conv3x3-bn (+identity) -relu."""
    stride = blk['stride']
    identity = x
    out, s, sq, cnt = conv2d_bn_stats(x, blk['conv1_w'], stride, 1)
    N, H, W, C = out.shape
    out = bn_apply(out.reshape(-1, C), s, sq, cnt, blk['bn1_g'], blk['bn1_b'],
                   relu=True).reshape(N, H, W, C)
    out, s, sq, cnt = conv2d_bn_stats(out, blk['conv2_w'], 1, 1)
    if 'down_w' in blk:
        identity, ds, dsq, dcnt = conv2d_bn_stats(x, blk['down_w'], stride, 0)
        identity = bn_apply(identity.reshape(-1, C), ds, dsq, dcnt,
                            blk['down_g'], blk['down_b'],
                            relu=False).reshape(N, H, W, C)
    out = bn_apply(out.reshape(-1, C), s, sq, cnt, blk['bn2_g'], blk['bn2_b'],
                   residual=identity.reshape(-1, C),
                   relu=True).reshape(N, H, W, C)
    return out


# ----------------------------------------------------------------------------
# Parameters (deterministic init; shapes exactly as torchvision resnet18 with
# replaced conv1 / fc)
# ----------------------------------------------------------------------------
def _conv_w(key, cout, cin, k):
    fan_in = cin * k * k
    return jax.random.normal(key, (cout, cin, k, k), jnp.float32) * \
        (2.0 / fan_in) ** 0.5


def init_resnet18_params(key, num_class=1000, in_channels=3):
    keys = iter(jax.random.split(key, 64))
    p = {
        'conv1_w': _conv_w(next(keys), 64, in_channels, 7),
        'bn1_g': jnp.ones((64,), jnp.float32),
        'bn1_b': jnp.zeros((64,), jnp.float32),
    }
    layers = []
    in_c = 64
    for li, c in enumerate([64, 128, 256, 512]):
        blocks = []
        for bi in range(2):
            stride = 2 if (li > 0 and bi == 0) else 1
            blk = {
                'stride': stride,
                'conv1_w': _conv_w(next(keys), c, in_c, 3),
                'bn1_g': jnp.ones((c,), jnp.float32),
                'bn1_b': jnp.zeros((c,), jnp.float32),
                'conv2_w': _conv_w(next(keys), c, c, 3),
                'bn2_g': jnp.ones((c,), jnp.float32),
                'bn2_b': jnp.zeros((c,), jnp.float32),
            }
            if stride != 1 or in_c != c:
                blk['down_w'] = _conv_w(next(keys), c, in_c, 1)
                blk['down_g'] = jnp.ones((c,), jnp.float32)
                blk['down_b'] = jnp.zeros((c,), jnp.float32)
            blocks.append(blk)
            in_c = c
        layers.append(blocks)
    p['layers'] = layers
    p['fc_w'] = jax.random.normal(next(keys), (num_class, 512),
                                  jnp.float32) * (1.0 / 512) ** 0.5
    p['fc_b'] = jnp.zeros((num_class,), jnp.float32)
    return p


# ----------------------------------------------------------------------------
# Full forward
# ----------------------------------------------------------------------------
def resnet18_forward(params, x_nchw):
    # NCHW -> NHWC, bf16 activations (GEMM-native; BN math stays in f32).
    x = jnp.transpose(x_nchw, (0, 2, 3, 1)).astype(jnp.bfloat16)
    x, s, sq, cnt = conv2d_bn_stats(x, params['conv1_w'], stride=2, pad=3)
    N, H, W, C = x.shape
    x = bn_apply(x.reshape(-1, C), s, sq, cnt, params['bn1_g'],
                 params['bn1_b'], relu=True).reshape(N, H, W, C)
    x = maxpool_3x3_s2_p1(x)
    for blocks in params['layers']:
        for blk in blocks:
            x = basic_block(x, blk)
    # Adaptive average pool to 1x1 (tiny glue reduction over spatial dims).
    x = jnp.mean(x.astype(jnp.float32), axis=(1, 2))              # (N, 512)
    # Linear(512, num_class): Pallas GEMM + tiny glue bias add.
    logits = pallas_matmul(x, params['fc_w'].T)                   # (N, num_class)
    return logits + params['fc_b'][None, :]


if __name__ == "__main__":
    key = jax.random.PRNGKey(0)
    pkey, xkey = jax.random.split(key)

    num_class, in_channels = 10, 3
    params = init_resnet18_params(pkey, num_class=num_class,
                                  in_channels=in_channels)

    # Small NCHW input consistent with Conv2d(in_channels, 64, 7, stride=2, pad=3)
    x = jax.random.normal(xkey, (2, in_channels, 32, 32), jnp.float32)

    logits = resnet18_forward(params, x)
    jax.block_until_ready(logits)
    assert logits.shape == (2, num_class)
    print("KERNEL_OK")
</pallas_src>

<mosaic_0001>
module attributes {stable_mosaic.version = 11 : i64} {
  func.func @_matmul_stats_kernel(%arg0: i32, %arg1: i32, %arg2: i32, %arg3: memref<512x147xbf16, #tpu.memory_space<vmem>>, %arg4: memref<147x64xbf16, #tpu.memory_space<vmem>>, %arg5: memref<512x64xbf16, #tpu.memory_space<vmem>>, %arg6: memref<1x1x64xf32, #tpu.memory_space<vmem>>, %arg7: memref<1x1x64xf32, #tpu.memory_space<vmem>>, %arg8: memref<512x64xf32, #tpu.memory_space<vmem>>) attributes {dimension_semantics = [#tpu.dimension_semantics<parallel>, #tpu.dimension_semantics<parallel>, #tpu.dimension_semantics<arbitrary>], iteration_bounds = array<i64: 1, 1, 1>, scalar_prefetch = 0 : i64, scratch_operands = 1 : i64, tpu.core_type = #tpu.core_type<tc>, window_params = [{transform_indices = @transform_0, window_bounds = array<i64: 512, 147>}, {transform_indices = @transform_1, window_bounds = array<i64: 147, 64>}, {transform_indices = @transform_2, window_bounds = array<i64: 512, 64>}, {transform_indices = @transform_3, window_bounds = array<i64: 1, 1, 64>}, {transform_indices = @transform_4, window_bounds = array<i64: 1, 1, 64>}]} {
    %c0_i32 = arith.constant 0 : i32
    %0 = arith.cmpi eq, %arg2, %c0_i32 : i32
    %1 = arith.extui %0 : i1 to i32
    %c0_i32_0 = arith.constant 0 : i32
    %2 = arith.cmpi ne, %1, %c0_i32_0 : i32
    scf.if %2 {
      %cst_10 = arith.constant 0.000000e+00 : f32
      %12 = vector.broadcast %cst_10 : f32 to vector<512x64xf32>
      %c0_11 = arith.constant 0 : index
      %c0_12 = arith.constant 0 : index
      %13 = vector.load %arg8[%c0_11, %c0_12] : memref<512x64xf32, #tpu.memory_space<vmem>>, vector<512x64xf32>
      tpu.vector_store %arg8[%c0_11, %c0_12], %12 {strides = array<i32>} : memref<512x64xf32, #tpu.memory_space<vmem>>, vector<512x64xf32>,
    } else {
    }
    %c0 = arith.constant 0 : index
    %c0_1 = arith.constant 0 : index
    %3 = vector.load %arg8[%c0, %c0_1] : memref<512x64xf32, #tpu.memory_space<vmem>>, vector<512x64xf32>
    %c0_2 = arith.constant 0 : index
    %c0_3 = arith.constant 0 : index
    %4 = vector.load %arg3[%c0_2, %c0_3] : memref<512x147xbf16, #tpu.memory_space<vmem>>, vector<512x147xbf16>
    %c0_4 = arith.constant 0 : index
    %c0_5 = arith.constant 0 : index
    %5 = vector.load %arg4[%c0_4, %c0_5] : memref<147x64xbf16, #tpu.memory_space<vmem>>, vector<147x64xbf16>
    %cst = arith.constant dense<0.000000e+00> : vector<512x64xf32>
    %6 = tpu.matmul %4, %5, %cst {dimension_numbers = #tpu.dot_dimension_numbers<[1], [0], [0], [1], [0, 0, 1, 1], [], []>} : vector<512x147xbf16>, vector<147x64xbf16>, vector<512x64xf32> -> vector<512x64xf32>
    %7 = arith.addf %3, %6 : vector<512x64xf32>
    %c0_6 = arith.constant 0 : index
    %c0_7 = arith.constant 0 : index
    %8 = vector.load %arg8[%c0_6, %c0_7] : memref<512x64xf32, #tpu.memory_space<vmem>>, vector<512x64xf32>
    tpu.vector_store %arg8[%c0_6, %c0_7], %7 {strides = array<i32>} : memref<512x64xf32, #tpu.memory_space<vmem>>, vector<512x64xf32>,
    %c0_i32_8 = arith.constant 0 : i32
    %9 = arith.cmpi eq, %arg2, %c0_i32_8 : i32
    %10 = arith.extui %9 : i1 to i32
    %c0_i32_9 = arith.constant 0 : i32
    %11 = arith.cmpi ne, %10, %c0_i32_9 : i32
    scf.if %11 {
      %c0_10 = arith.constant 0 : index
      %c0_11 = arith.constant 0 : index
      %12 = vector.load %arg8[%c0_10, %c0_11] : memref<512x64xf32, #tpu.memory_space<vmem>>, vector<512x64xf32>
      %13 = arith.truncf %12 : vector<512x64xf32> to vector<512x64xbf16>
      %c0_12 = arith.constant 0 : index
      %c0_13 = arith.constant 0 : index
      %14 = vector.load %arg5[%c0_12, %c0_13] : memref<512x64xbf16, #tpu.memory_space<vmem>>, vector<512x64xbf16>
      tpu.vector_store %arg5[%c0_12, %c0_13], %13 {strides = array<i32>} : memref<512x64xbf16, #tpu.memory_space<vmem>>, vector<512x64xbf16>,
      %cst_14 = arith.constant dense<0.000000e+00> : vector<64xf32>
      %15 = vector.multi_reduction <add>, %12, %cst_14 [0] : vector<512x64xf32> to vector<64xf32>
      %16 = vector.shape_cast %15 : vector<64xf32> to vector<1x1x64xf32>
      %c0_15 = arith.constant 0 : index
      %c0_16 = arith.constant 0 : index
      %c0_17 = arith.constant 0 : index
      %17 = vector.load %arg6[%c0_15, %c0_16, %c0_17] : memref<1x1x64xf32, #tpu.memory_space<vmem>>, vector<1x1x64xf32>
      tpu.vector_store %arg6[%c0_15, %c0_16, %c0_17], %16 {strides = array<i32>} : memref<1x1x64xf32, #tpu.memory_space<vmem>>, vector<1x1x64xf32>,
      %18 = arith.mulf %12, %12 : vector<512x64xf32>
      %cst_18 = arith.constant dense<0.000000e+00> : vector<64xf32>
      %19 = vector.multi_reduction <add>, %18, %cst_18 [0] : vector<512x64xf32> to vector<64xf32>
      %20 = vector.shape_cast %19 : vector<64xf32> to vector<1x1x64xf32>
      %c0_19 = arith.constant 0 : index
      %c0_20 = arith.constant 0 : index
      %c0_21 = arith.constant 0 : index
      %21 = vector.load %arg7[%c0_19, %c0_20, %c0_21] : memref<1x1x64xf32, #tpu.memory_space<vmem>>, vector<1x1x64xf32>
      tpu.vector_store %arg7[%c0_19, %c0_20, %c0_21], %20 {strides = array<i32>} : memref<1x1x64xf32, #tpu.memory_space<vmem>>, vector<1x1x64xf32>,
    } else {
    }
    return
  }
  func.func @transform_0(%arg0: i32, %arg1: i32, %arg2: i32) -> (i32, i32) {
    %c0_i32 = arith.constant 0 : i32
    return %arg0, %arg2 : i32, i32
  }
  func.func @transform_1(%arg0: i32, %arg1: i32, %arg2: i32) -> (i32, i32) {
    %c0_i32 = arith.constant 0 : i32
    return %arg2, %arg1 : i32, i32
  }
  func.func @transform_2(%arg0: i32, %arg1: i32, %arg2: i32) -> (i32, i32) {
    %c0_i32 = arith.constant 0 : i32
    return %arg0, %arg1 : i32, i32
  }
  func.func @transform_3(%arg0: i32, %arg1: i32, %arg2: i32) -> (i32, i32, i32) {
    %c0_i32 = arith.constant 0 : i32
    %c0_i32_0 = arith.constant 0 : i32
    return %arg0, %c0_i32, %arg1 : i32, i32, i32
  }
  func.func @transform_4(%arg0: i32, %arg1: i32, %arg2: i32) -> (i32, i32, i32) {
    %c0_i32 = arith.constant 0 : i32
    %c0_i32_0 = arith.constant 0 : i32
    return %arg0, %c0_i32, %arg1 : i32, i32, i32
  }
}

</mosaic_0001>

<bundles_post_ra>
// kernel: tpu_custom_call.1
= control target key start
LH: loop header
LB: loop body
LE: loop exit
PB: predicated region body
PF: predicated region fallthrough
CT: control target
= control target key end

     0   :  { %10 = vsyncpa [#allocation4], 0  ;;  %vm675_vm0 = vcmask 1040384   ;;  %vm676_vm1 = vcmask 1041408   ;;  %v2183_v4 = vmov 65535   ;;  %s3537_s0 = inlined_call_operand.vmem [shape: bf16[512,147], index: 0, kind: input, shape index: {}]   ;;  %s3538_s1 = inlined_call_operand.vmem [shape: bf16[147,64], index: 1, kind: input, shape index: {}]   ;;  %s3539_s2 = inlined_call_operand.vmem [shape: bf16[512,64], index: 2, kind: output, shape index: {0}]   ;;  %s3540_s3 = inlined_call_operand.hbm [shape: f32[1,1,64], index: 3, kind: output, shape index: {1}]   ;;  %s3541_s4 = inlined_call_operand.hbm [shape: f32[1,1,64], index: 4, kind: output, shape index: {2}]  }
   0x1   :  { %v2109_v0 = vld [vmem:[%s3538_s1 + $0x38] sm:$0xff]  ;;  %v232_v1 = vld [vmem:[%s3538_s1 + $0x48] sm:$0x3]  ;;  %v2108_v3 = vld [vmem:[%s3538_s1 + $0x30] sm:$0xff]  ;;  %v677_v5 = vsel %vm675_vm0, 4294967295, %v2183_v4 }
   0x2   :  { %v558_v2 = vunpack.c.l.b16 %v232_v1  ;;  %682 = vmatpush.bf16.msra.mxu0 %v2109_v0  ;;  %2111 = vmatpush.bf16.msra.mxu2 %v2109_v0  ;;  %v678_v7 = vsel %vm676_vm1, %v677_v5, 0  ;;  %v2107_v9 = vld [vmem:[%s3538_s1 + $0x28] sm:$0xff] }
   0x4   :  { %v568_v6 = vpack.c.b16 %v558_v2, %v558_v2 }
   0x6   :  { %v680_v8 = vand.u32 %v678_v7, %v568_v6  ;;  %683 = vmatpush.bf16.msra.mxu0 %v2108_v3  ;;  %2112 = vmatpush.bf16.msra.mxu2 %v2108_v3 }
   0x7   :  { %11 = vsyncpa [#allocation6], 0  ;;  %v2110_v10 = vld [vmem:[%s3538_s1 + $0x40] sm:$0xff]  ;;  %v1718_v12 = vld [vmem:[%s3537_s0 + $0x8] sm:$0xf0]  ;;  %vm578_vm2 = vcmask 154624  }
   0x8   :  { %857 = vmatpush.bf16.msra.mxu1 %v680_v8  ;;  %v2038_v11 = vld [vmem:[%s3537_s0 + $0x4] sm:$0xf]  ;;  %2119 = vmatpush.bf16.msra.mxu3 %v680_v8  ;;  %v2105_v15 = vld [vmem:[%s3538_s1 + $0x18] sm:$0xff]  ;;  %v2104_v16 = vld [vmem:[%s3538_s1 + $0x10] sm:$0xff]  ;;  %vm21_vm3 = vcmask 523264   ;;  %vm1280_vm4 = vcmask 519168  }
   0x9   :  { %v1721_v13 = vor.u32 %v2038_v11, %v1718_v12  ;;  %v2106_v14 = vld [vmem:[%s3538_s1 + $0x20] sm:$0xff]  ;;  %v2103_v17 = vld [vmem:[%s3538_s1 + $0x8] sm:$0xff]  ;;  %v2040_v18 = vld [vmem:[%s3537_s0 + $0x14] sm:$0xf]  ;;  %s1687_s15 = sshll.u32 %s3540_s3, 4  ;;  %vm1478_vm5 = vcmask 516096   ;;  %s1688_s15 = int_to_ptr.hbm [resolvable:$true] %s1687_s15 }
   0xa   :  { %684 = vmatpush.bf16.msra.mxu0 %v2107_v9  ;;  %2113 = vmatpush.bf16.msra.mxu2 %v2107_v9  ;;  %v1726_v19 = vld [vmem:[%s3537_s0 + $0x18] sm:$0xf0]  ;;  %v2102_v21 = vld [vmem:[%s3538_s1] sm:$0xff]  ;;  %v2039_v23 = vld [vmem:[%s3537_s0 + $0x4] sm:$0xf0]  ;;  %s2186_s16 = smov [#allocation5]  }
   0xb   :  { %v1729_v20 = vor.u32 %v2040_v18, %v1726_v19  ;;  %v1716_v22 = vld [vmem:[%s3537_s0] sm:$0xf]  ;;  %v2042_v25 = vld [vmem:[%s3537_s0 + $0x24] sm:$0xf]  ;;  %v1734_v26 = vld [vmem:[%s3537_s0 + $0x28] sm:$0xf0] }
   0xc   :  { %858 = vmatpush.bf16.msra.mxu1 %v2110_v10  ;;  %2120 = vmatpush.bf16.msra.mxu3 %v2110_v10  ;;  %v1717_v24 = vor.u32 %v2039_v23, %v1716_v22  ;;  %v1737_v27 = vor.u32 %v2042_v25, %v1734_v26  ;;  %v1724_v28 = vld [vmem:[%s3537_s0 + $0x10] sm:$0xf]  ;;  %v2041_v29 = vld [vmem:[%s3537_s0 + $0x14] sm:$0xf0]  ;;  %v1844_v31 = vld [vmem:[%s3537_s0 + $0x100] sm:$0xf] }
   0xd   :  { %v1725_v30 = vor.u32 %v2041_v29, %v1724_v28  ;;  %v2071_v32 = vld [vmem:[%s3537_s0 + $0x104] sm:$0xf0]  ;;  %v2044_v34 = vld [vmem:[%s3537_s0 + $0x34] sm:$0xf]  ;;  %v1742_v35 = vld [vmem:[%s3537_s0 + $0x38] sm:$0xf0] }
   0xe   :  { %685 = vmatpush.bf16.msra.mxu0 %v2106_v14  ;;  %2114 = vmatpush.bf16.msra.mxu2 %v2106_v14  ;;  %v1845_v33 = vor.u32 %v2071_v32, %v1844_v31  ;;  %v1745_v36 = vor.u32 %v2044_v34, %v1742_v35  ;;  %v1732_v37 = vld [vmem:[%s3537_s0 + $0x20] sm:$0xf]  ;;  %v2043_v38 = vld [vmem:[%s3537_s0 + $0x24] sm:$0xf0]  ;;  %v1852_v40 = vld [vmem:[%s3537_s0 + $0x110] sm:$0xf] }
   0xf   :  { %2006 = vmatmul.msk.bf16.vlgmr.msra.gmra.mxu1 %vm578_vm2, %v1721_v13  ;;  %v1733_v39 = vor.u32 %v2043_v38, %v1732_v37  ;;  %v2073_v41 = vld [vmem:[%s3537_s0 + $0x114] sm:$0xf0]  ;;  %v2072_v42 = vld [vmem:[%s3537_s0 + $0x114] sm:$0xf]  ;;  %v1854_v44 = vld [vmem:[%s3537_s0 + $0x118] sm:$0xf0] }
  0x10   :  { %v1853_v43 = vor.u32 %v2073_v41, %v1852_v40  ;;  %v1857_v45 = vor.u32 %v2072_v42, %v1854_v44  ;;  %v2046_v46 = vld [vmem:[%s3537_s0 + $0x44] sm:$0xf]  ;;  %v1750_v47 = vld [vmem:[%s3537_s0 + $0x48] sm:$0xf0]  ;;  %v1740_v49 = vld [vmem:[%s3537_s0 + $0x30] sm:$0xf] }
  0x11   :  { %v1753_v48 = vor.u32 %v2046_v46, %v1750_v47  ;;  %v2045_v50 = vld [vmem:[%s3537_s0 + $0x34] sm:$0xf0]  ;;  %v1860_v52 = vld [vmem:[%s3537_s0 + $0x120] sm:$0xf]  ;;  %v2075_v53 = vld [vmem:[%s3537_s0 + $0x124] sm:$0xf0] }
  0x12   :  { %686 = vmatpush.bf16.msra.mxu0 %v2105_v15  ;;  %2115 = vmatpush.bf16.msra.mxu2 %v2105_v15  ;;  %v1741_v51 = vor.u32 %v2045_v50, %v1740_v49  ;;  %v2074_v54 = vld [vmem:[%s3537_s0 + $0x124] sm:$0xf]  ;;  %v1861_v55 = vor.u32 %v2075_v53, %v1860_v52  ;;  %v1862_v56 = vld [vmem:[%s3537_s0 + $0x128] sm:$0xf0]  ;;  %v2048_v58 = vld [vmem:[%s3537_s0 + $0x54] sm:$0xf] }
  0x13   :  { %2023 = vmatmul.msk.bf16.vlgmr.msra.gmra.mxu3 %vm578_vm2, %v1857_v45  ;;  %v1865_v57 = vor.u32 %v2074_v54, %v1862_v56  ;;  %v1758_v59 = vld [vmem:[%s3537_s0 + $0x58] sm:$0xf0]  ;;  %v1748_v61 = vld [vmem:[%s3537_s0 + $0x40] sm:$0xf]  ;;  %v2047_v62 = vld [vmem:[%s3537_s0 + $0x44] sm:$0xf0] }
  0x14   :  { %v1761_v60 = vor.u32 %v2048_v58, %v1758_v59  ;;  %v1749_v63 = vor.u32 %v2047_v62, %v1748_v61  ;;  %v1868_v0 = vld [vmem:[%s3537_s0 + $0x130] sm:$0xf]  ;;  %v2077_v1 = vld [vmem:[%s3537_s0 + $0x134] sm:$0xf0]  ;;  %v2076_v2 = vld [vmem:[%s3537_s0 + $0x134] sm:$0xf] }
  0x15   :  { %v1869_v3 = vor.u32 %v2077_v1, %v1868_v0  ;;  %v1870_v4 = vld [vmem:[%s3537_s0 + $0x138] sm:$0xf0]  ;;  %v2050_v6 = vld [vmem:[%s3537_s0 + $0x64] sm:$0xf]  ;;  %v1766_v7 = vld [vmem:[%s3537_s0 + $0x68] sm:$0xf0] }
  0x16   :  { %687 = vmatpush.bf16.msra.mxu0 %v2104_v16  ;;  %2116 = vmatpush.bf16.msra.mxu2 %v2104_v16  ;;  %v1873_v5 = vor.u32 %v2076_v2, %v1870_v4  ;;  %v1769_v8 = vor.u32 %v2050_v6, %v1766_v7  ;;  %v1756_v9 = vld [vmem:[%s3537_s0 + $0x50] sm:$0xf]  ;;  %v2049_v10 = vld [vmem:[%s3537_s0 + $0x54] sm:$0xf0]  ;;  %v1876_v12 = vld [vmem:[%s3537_s0 + $0x140] sm:$0xf] }
  0x17   :  { %v1757_v11 = vor.u32 %v2049_v10, %v1756_v9  ;;  %v2079_v13 = vld [vmem:[%s3537_s0 + $0x144] sm:$0xf0]  ;;  %v2078_v14 = vld [vmem:[%s3537_s0 + $0x144] sm:$0xf]  ;;  %v1878_v16 = vld [vmem:[%s3537_s0 + $0x148] sm:$0xf0] }
  0x18   :  { %v1877_v15 = vor.u32 %v2079_v13, %v1876_v12  ;;  %v2052_v18 = vld [vmem:[%s3537_s0 + $0x74] sm:$0xf]  ;;  %v1774_v19 = vld [vmem:[%s3537_s0 + $0x78] sm:$0xf0]  ;;  %v1764_v22 = vld [vmem:[%s3537_s0 + $0x60] sm:$0xf] }
  0x19   :  { %v2051_v23 = vld [vmem:[%s3537_s0 + $0x64] sm:$0xf0]  ;;  %v1884_v25 = vld [vmem:[%s3537_s0 + $0x150] sm:$0xf]  ;;  %v2081_v26 = vld [vmem:[%s3537_s0 + $0x154] sm:$0xf0] }
  0x1a   :  { %688 = vmatpush.bf16.msra.mxu0 %v2103_v17  ;;  %2117 = vmatpush.bf16.msra.mxu2 %v2103_v17  ;;  %v1881_v17 = vor.u32 %v2078_v14, %v1878_v16  ;;  %v2080_v28 = vld [vmem:[%s3537_s0 + $0x154] sm:$0xf]  ;;  %v1886_v29 = vld [vmem:[%s3537_s0 + $0x158] sm:$0xf0]  ;;  %v2054_v31 = vld [vmem:[%s3537_s0 + $0x84] sm:$0xf] }
  0x1b   :  { %v1782_v32 = vld [vmem:[%s3537_s0 + $0x88] sm:$0xf0]  ;;  %v1772_v34 = vld [vmem:[%s3537_s0 + $0x70] sm:$0xf]  ;;  %v2053_v35 = vld [vmem:[%s3537_s0 + $0x74] sm:$0xf0] }
  0x1c   :  { %v1773_v37 = vor.u32 %v2053_v35, %v1772_v34  ;;  %v1790_v40 = vld [vmem:[%s3537_s0 + $0x98] sm:$0xf0]  ;;  %v1780_v42 = vld [vmem:[%s3537_s0 + $0x80] sm:$0xf]  ;;  %v2083_v50 = vld [vmem:[%s3537_s0 + $0x164] sm:$0xf0] }
  0x1d   :  { %v1892_v49 = vld [vmem:[%s3537_s0 + $0x160] sm:$0xf]  ;;  %v2082_v53 = vld [vmem:[%s3537_s0 + $0x164] sm:$0xf]  ;;  %v1894_v54 = vld [vmem:[%s3537_s0 + $0x168] sm:$0xf0] }
  0x1e   :  { %689 = vmatpush.bf16.msra.mxu0 %v2102_v21  ;;  %2118 = vmatpush.bf16.msra.mxu2 %v2102_v21  ;;  %v1777_v21 = vor.u32 %v2052_v18, %v1774_v19  ;;  %v1893_v52 = vor.u32 %v2083_v50, %v1892_v49  ;;  %v2058_v58 = vld [vmem:[%s3537_s0 + $0xa4] sm:$0xf]  ;;  %v1798_v59 = vld [vmem:[%s3537_s0 + $0xa8] sm:$0xf0]  ;;  %v1788_v62 = vld [vmem:[%s3537_s0 + $0x90] sm:$0xf] }
  0x1f   :  { %2007 = vmatmul.msk.bf16.gmra.mxu1 %vm578_vm2, %v1729_v20  ;;  %v2184_v20 = vmov 0.0   ;;  %v1801_v61 = vor.u32 %v2058_v58, %v1798_v59  ;;  %v1900_v4 = vld [vmem:[%s3537_s0 + $0x170] sm:$0xf]  ;;  %v2084_v7 = vld [vmem:[%s3537_s0 + $0x174] sm:$0xf]  ;;  %s1696_s17 = sshll.u32 %s2186_s16, 4  ;;  %s1697_s17 = int_to_ptr.vmem [resolvable:$true] %s1696_s17 }
  0x20   :  { %22 = vst.msk [vmem:[#allocation2] sm:$0xff] %vm21_vm3, %v2184_v20  ;;  %v2060_v19 = vld [vmem:[%s3537_s0 + $0xb4] sm:$0xf]  ;;  %v2086_v34 = vld [vmem:[%s3537_s0 + $0x184] sm:$0xf]  ;;  %s1698_s20 = sshll.u32 %s3541_s4, 4  ;;  %s1699_s20 = int_to_ptr.hbm [resolvable:$true] %s1698_s20 }
  0x21   :  { %690 = vmatmul.bf16.vlgmr.msra.gmra.mxu0 %v1717_v24  ;;  %770 = vmatmul.bf16.vlgmr.msra.gmra.mxu2 %v1845_v33  ;;  %23 = vst.msk [vmem:[#allocation2 + $0x8] sm:$0xff] %vm21_vm3, %v2184_v20  ;;  %v1765_v24 = vor.u32 %v2051_v23, %v1764_v22  ;;  %v1785_v33 = vor.u32 %v2054_v31, %v1782_v32  ;;  %v1910_v35 = vld [vmem:[%s3537_s0 + $0x188] sm:$0xf0] }
  0x22   :  { %24 = vst.msk [vmem:[#allocation2 + $0x10] sm:$0xff] %vm21_vm3, %v2184_v20 }
  0x23   :  { %2024 = vmatmul.msk.bf16.gmra.mxu3 %vm578_vm2, %v1865_v57  ;;  %25 = vst.msk [vmem:[#allocation2 + $0x18] sm:$0xff] %vm21_vm3, %v2184_v20 }
  0x24   :  { %26 = vst.msk [vmem:[#allocation2 + $0x20] sm:$0xff] %vm21_vm3, %v2184_v20 }
  0x25   :  { %27 = vst.msk [vmem:[#allocation2 + $0x28] sm:$0xff] %vm21_vm3, %v2184_v20 }
  0x26   :  { %28 = vst.msk [vmem:[#allocation2 + $0x30] sm:$0xff] %vm21_vm3, %v2184_v20 }
  0x27   :  { %29 = vst.msk [vmem:[#allocation2 + $0x38] sm:$0xff] %vm21_vm3, %v2184_v20  ;;  %v86_v46 = vld [vmem:[#allocation2] sm:$0xff] }
  0x28   :  { %30 = vst.msk [vmem:[#allocation2 + $0x40] sm:$0xff] %vm21_vm3, %v2184_v20  ;;  %v87_v12 = vld [vmem:[#allocation2 + $0x8] sm:$0xff] }
  0x29   :  { %31 = vst.msk [vmem:[#allocation2 + $0x48] sm:$0xff] %vm21_vm3, %v2184_v20  ;;  %v88_v14 = vld [vmem:[#allocation2 + $0x10] sm:$0xff] }
  0x2a   :  { %32 = vst.msk [vmem:[#allocation2 + $0x50] sm:$0xff] %vm21_vm3, %v2184_v20 }
  0x2b   :  { %33 = vst.msk [vmem:[#allocation2 + $0x58] sm:$0xff] %vm21_vm3, %v2184_v20 }
  0x2c   :  { %34 = vst.msk [vmem:[#allocation2 + $0x60] sm:$0xff] %vm21_vm3, %v2184_v20  ;;  %v91_v59 = vld [vmem:[#allocation2 + $0x28] sm:$0xff] }
  0x2d   :  { %35 = vst.msk [vmem:[#allocation2 + $0x68] sm:$0xff] %vm21_vm3, %v2184_v20 }
  0x2e   :  { %36 = vst.msk [vmem:[#allocation2 + $0x70] sm:$0xff] %vm21_vm3, %v2184_v20 }
  0x2f   :  { %2008 = vmatmul.msk.bf16.gmra.mxu1 %vm578_vm2, %v1737_v27  ;;  %v1885_v27 = vor.u32 %v2081_v26, %v1884_v25  ;;  %37 = vst.msk [vmem:[#allocation2 + $0x78] sm:$0xff] %vm21_vm3, %v2184_v20  ;;  %v1796_v25 = vld [vmem:[%s3537_s0 + $0xa0] sm:$0xf]  ;;  %v2059_v26 = vld [vmem:[%s3537_s0 + $0xa4] sm:$0xf0] }
  0x30   :  { %38 = vst.msk [vmem:[#allocation2 + $0x80] sm:$0xff] %vm21_vm3, %v2184_v20 }
  0x31   :  { %695 = vmatmul.bf16.gmra.mxu0 %v1725_v30  ;;  %775 = vmatmul.bf16.gmra.mxu2 %v1853_v43  ;;  %v1889_v30 = vor.u32 %v2080_v28, %v1886_v29  ;;  %39 = vst.msk [vmem:[#allocation2 + $0x88] sm:$0xff] %vm21_vm3, %v2184_v20  ;;  %v2055_v43 = vld [vmem:[%s3537_s0 + $0x84] sm:$0xf0]  ;;  %v1797_v28 = vor.u32 %v2059_v26, %v1796_v25  ;;  %v2088_v25 = vld [vmem:[%s3537_s0 + $0x194] sm:$0xf] }
  0x32   :  { %40 = vst.msk [vmem:[#allocation2 + $0x90] sm:$0xff] %vm21_vm3, %v2184_v20  ;;  %v1781_v45 = vor.u32 %v2055_v43, %v1780_v42  ;;  %v1918_v26 = vld [vmem:[%s3537_s0 + $0x198] sm:$0xf0] }
  0x33   :  { %2025 = vmatmul.msk.bf16.gmra.mxu3 %vm578_vm2, %v1873_v5  ;;  %41 = vst.msk [vmem:[#allocation2 + $0x98] sm:$0xff] %vm21_vm3, %v2184_v20  ;;  %v2085_v5 = vld [vmem:[%s3537_s0 + $0x174] sm:$0xf0] }
  0x34   :  { %42 = vst.msk [vmem:[#allocation2 + $0xa0] sm:$0xff] %vm21_vm3, %v2184_v20  ;;  %v1901_v6 = vor.u32 %v2085_v5, %v1900_v4 }
  0x35   :  { %43 = vst.msk [vmem:[#allocation2 + $0xa8] sm:$0xff] %vm21_vm3, %v2184_v20 }
  0x36   :  { %44 = vst.msk [vmem:[#allocation2 + $0xb0] sm:$0xff] %vm21_vm3, %v2184_v20 }
  0x37   :  { %45 = vst.msk [vmem:[#allocation2 + $0xb8] sm:$0xff] %vm21_vm3, %v2184_v20 }
  0x38   :  { %46 = vst.msk [vmem:[#allocation2 + $0xc0] sm:$0xff] %vm21_vm3, %v2184_v20 }
  0x39   :  { %47 = vst.msk [vmem:[#allocation2 + $0xc8] sm:$0xff] %vm21_vm3, %v2184_v20 }
  0x3a   :  { %48 = vst.msk [vmem:[#allocation2 + $0xd0] sm:$0xff] %vm21_vm3, %v2184_v20 }
  0x3b   :  { %49 = vst.msk [vmem:[#allocation2 + $0xd8] sm:$0xff] %vm21_vm3, %v2184_v20 }
  0x3c   :  { %50 = vst.msk [vmem:[#allocation2 + $0xe0] sm:$0xff] %vm21_vm3, %v2184_v20 }
  0x3d   :  { %51 = vst.msk [vmem:[#allocation2 + $0xe8] sm:$0xff] %vm21_vm3, %v2184_v20 }
  0x3e   :  { %52 = vst.msk [vmem:[#allocation2 + $0xf0] sm:$0xff] %vm21_vm3, %v2184_v20 }
  0x3f   :  { %2009 = vmatmul.msk.bf16.gmra.mxu1 %vm578_vm2, %v1745_v36  ;;  %53 = vst.msk [vmem:[#allocation2 + $0xf8] sm:$0xff] %vm21_vm3, %v2184_v20 }
  0x40   :  { %54 = vst.msk [vmem:[#allocation2 + $0x100] sm:$0xff] %vm21_vm3, %v2184_v20 }
  0x41   :  { %700 = vmatmul.bf16.gmra.mxu0 %v1733_v39  ;;  %780 = vmatmul.bf16.gmra.mxu2 %v1861_v55  ;;  %v2056_v39 = vld [vmem:[%s3537_s0 + $0x94] sm:$0xf]  ;;  %55 = vst.msk [vmem:[#allocation2 + $0x108] sm:$0xff] %vm21_vm3, %v2184_v20  ;;  %v1897_v55 = vor.u32 %v2082_v53, %v1894_v54 }
  0x42   :  { %v1793_v41 = vor.u32 %v2056_v39, %v1790_v40  ;;  %56 = vst.msk [vmem:[#allocation2 + $0x110] sm:$0xff] %vm21_vm3, %v2184_v20 }
  0x43   :  { %2026 = vmatmul.msk.bf16.gmra.mxu3 %vm578_vm2, %v1881_v17  ;;  %57 = vst.msk [vmem:[#allocation2 + $0x118] sm:$0xff] %vm21_vm3, %v2184_v20 }
  0x44   :  { %58 = vst.msk [vmem:[#allocation2 + $0x120] sm:$0xff] %vm21_vm3, %v2184_v20 }
  0x45   :  { %59 = vst.msk [vmem:[#allocation2 + $0x128] sm:$0xff] %vm21_vm3, %v2184_v20 }
  0x46   :  { %60 = vst.msk [vmem:[#allocation2 + $0x130] sm:$0xff] %vm21_vm3, %v2184_v20 }
  0x47   :  { %61 = vst.msk [vmem:[#allocation2 + $0x138] sm:$0xff] %vm21_vm3, %v2184_v20 }
  0x48   :  { %62 = vst.msk [vmem:[#allocation2 + $0x140] sm:$0xff] %vm21_vm3, %v2184_v20 }
  0x49   :  { %63 = vst.msk [vmem:[#allocation2 + $0x148] sm:$0xff] %vm21_vm3, %v2184_v20 }
  0x4a   :  { %64 = vst.msk [vmem:[#allocation2 + $0x150] sm:$0xff] %vm21_vm3, %v2184_v20 }
  0x4b   :  { %65 = vst.msk [vmem:[#allocation2 + $0x158] sm:$0xff] %vm21_vm3, %v2184_v20 }
  0x4c   :  { %66 = vst.msk [vmem:[#allocation2 + $0x160] sm:$0xff] %vm21_vm3, %v2184_v20 }
  0x4d   :  { %67 = vst.msk [vmem:[#allocation2 + $0x168] sm:$0xff] %vm21_vm3, %v2184_v20 }
  0x4e   :  { %68 = vst.msk [vmem:[#allocation2 + $0x170] sm:$0xff] %vm21_vm3, %v2184_v20 }
  0x4f   :  { %2010 = vmatmul.msk.bf16.gmra.mxu1 %vm578_vm2, %v1753_v48  ;;  %69 = vst.msk [vmem:[#allocation2 + $0x178] sm:$0xff] %vm21_vm3, %v2184_v20 }
  0x50   :  { %70 = vst.msk [vmem:[#allocation2 + $0x180] sm:$0xff] %vm21_vm3, %v2184_v20 }
  0x51   :  { %705 = vmatmul.bf16.gmra.mxu0 %v1741_v51  ;;  %785 = vmatmul.bf16.gmra.mxu2 %v1869_v3  ;;  %71 = vst.msk [vmem:[#allocation2 + $0x188] sm:$0xff] %vm21_vm3, %v2184_v20 }
  0x52   :  { %72 = vst.msk [vmem:[#allocation2 + $0x190] sm:$0xff] %vm21_vm3, %v2184_v20 }
  0x53   :  { %2027 = vmatmul.msk.bf16.gmra.mxu3 %vm578_vm2, %v1889_v30  ;;  %73 = vst.msk [vmem:[#allocation2 + $0x198] sm:$0xff] %vm21_vm3, %v2184_v20  ;;  %v1908_v30 = vld [vmem:[%s3537_s0 + $0x180] sm:$0xf] }
  0x54   :  { %74 = vst.msk [vmem:[#allocation2 + $0x1a0] sm:$0xff] %vm21_vm3, %v2184_v20 }
  0x55   :  { %75 = vst.msk [vmem:[#allocation2 + $0x1a8] sm:$0xff] %vm21_vm3, %v2184_v20 }
  0x56   :  { %76 = vst.msk [vmem:[#allocation2 + $0x1b0] sm:$0xff] %vm21_vm3, %v2184_v20 }
  0x57   :  { %77 = vst.msk [vmem:[#allocation2 + $0x1b8] sm:$0xff] %vm21_vm3, %v2184_v20 }
  0x58   :  { %78 = vst.msk [vmem:[#allocation2 + $0x1c0] sm:$0xff] %vm21_vm3, %v2184_v20 }
  0x59   :  { %79 = vst.msk [vmem:[#allocation2 + $0x1c8] sm:$0xff] %vm21_vm3, %v2184_v20 }
  0x5a   :  { %80 = vst.msk [vmem:[#allocation2 + $0x1d0] sm:$0xff] %vm21_vm3, %v2184_v20 }
  0x5b   :  { %81 = vst.msk [vmem:[#allocation2 + $0x1d8] sm:$0xff] %vm21_vm3, %v2184_v20 }
  0x5c   :  { %82 = vst.msk [vmem:[#allocation2 + $0x1e0] sm:$0xff] %vm21_vm3, %v2184_v20 }
  0x5d   :  { %83 = vst.msk [vmem:[#allocation2 + $0x1e8] sm:$0xff] %vm21_vm3, %v2184_v20 }
  0x5e   :  { %84 = vst.msk [vmem:[#allocation2 + $0x1f0] sm:$0xff] %vm21_vm3, %v2184_v20 }
  0x5f   :  { %2011 = vmatmul.msk.bf16.gmra.mxu1 %vm578_vm2, %v1761_v60  ;;  %85 = vst.msk [vmem:[#allocation2 + $0x1f8] sm:$0xff] %vm21_vm3, %v2184_v20  ;;  %v90_v20 = vld [vmem:[#allocation2 + $0x20] sm:$0xff] }
  0x61   :  { %710 = vmatmul.bf16.gmra.mxu0 %v1749_v63  ;;  %790 = vmatmul.bf16.gmra.mxu2 %v1877_v15  ;;  %v2057_v63 = vld [vmem:[%s3537_s0 + $0x94] sm:$0xf0] }
  0x62   :  { %v1789_v2 = vor.u32 %v2057_v63, %v1788_v62  ;;  %v89_v15 = vld [vmem:[#allocation2 + $0x18] sm:$0xff] }
  0x63   :  { %2028 = vmatmul.msk.bf16.gmra.mxu3 %vm578_vm2, %v1897_v55 }
  0x6f   :  { %2012 = vmatmul.msk.bf16.gmra.mxu1 %vm578_vm2, %v1769_v8  ;;  %v1902_v8 = vld [vmem:[%s3537_s0 + $0x178] sm:$0xf0] }
  0x70   :  { %v1905_v9 = vor.u32 %v2084_v7, %v1902_v8  ;;  %v1804_v8 = vld [vmem:[%s3537_s0 + $0xb0] sm:$0xf] }
  0x71   :  { %715 = vmatmul.bf16.gmra.mxu0 %v1757_v11  ;;  %795 = vmatmul.bf16.gmra.mxu2 %v1885_v27 }
  0x73   :  { %2029 = vmatmul.msk.bf16.gmra.mxu3 %vm578_vm2, %v1905_v9  ;;  %v2061_v9 = vld [vmem:[%s3537_s0 + $0xb4] sm:$0xf0] }
  0x7f   :  { %2013 = vmatmul.msk.bf16.gmra.mxu1 %vm578_vm2, %v1777_v21  ;;  %v1806_v21 = vld [vmem:[%s3537_s0 + $0xb8] sm:$0xf0] }
  0x81   :  { %720 = vmatmul.bf16.gmra.mxu0 %v1765_v24  ;;  %800 = vmatmul.bf16.gmra.mxu2 %v1893_v52  ;;  %v1809_v24 = vor.u32 %v2060_v19, %v1806_v21 }
  0x8c   :  { %v860_v36 = vpop.f32.mrf.mxu1 }
  0x8f   :  { %2014 = vmatmul.msk.bf16.gmra.mxu1 %vm578_vm2, %v1785_v33  ;;  %v2087_v33 = vld [vmem:[%s3537_s0 + $0x184] sm:$0xf0] }
  0x91   :  { %725 = vmatmul.bf16.gmra.mxu0 %v1773_v37  ;;  %805 = vmatmul.bf16.gmra.mxu2 %v1901_v6  ;;  %v1913_v37 = vor.u32 %v2086_v34, %v1910_v35 }
  0x93   :  { %2030 = vmatmul.msk.bf16.gmra.mxu3 %vm578_vm2, %v1913_v37  ;;  %v93_v37 = vld [vmem:[#allocation2 + $0x38] sm:$0xff] }
  0x94   :  { %v2476_v38 = vpop.f32.mrf.mxu1 }
  0x9c   :  { %v2506_v44 = vpop.f32.mrf.mxu1 }
  0x9e   :  { %v691_v47 = vpop.f32.mrf.mxu0 }
  0x9f   :  { %2015 = vmatmul.msk.bf16.gmra.mxu1 %vm578_vm2, %v1793_v41  ;;  %v861_v48 = vadd.f32 %v860_v36, %v691_v47  ;;  %v1909_v36 = vor.u32 %v2087_v33, %v1908_v30 }
  0xa1   :  { %v1020_v51 = vadd.f32 %v861_v48, %v86_v46  ;;  %730 = vmatmul.bf16.gmra.mxu0 %v1781_v45  ;;  %810 = vmatmul.bf16.gmra.mxu2 %v1909_v36 }
  0xa3   :  { %1085 = vst.msk [vmem:[#allocation2] sm:$0xff] %vm21_vm3, %v1020_v51 }
  0xa4   :  { %v867_v56 = vpop.f32.mrf.mxu1  ;;  %v2676_v62 = vpop.f32.mrf.mxu2 }
  0xa6   :  { %v693_v57 = vpop.f32.mrf.mxu0 }
  0xa7   :  { %v863_v10 = vadd.f32 %v2476_v38, %v693_v57 }
  0xa9   :  { %v1021_v17 = vadd.f32 %v863_v10, %v87_v12 }
  0xaa   :  { %v2557_v60 = vld [vmem:[#allocation2] sm:$0xff] }
  0xab   :  { %v1216_v0 = vpack.c.bf16 %v2557_v60, %v2557_v60  ;;  %1086 = vst.msk [vmem:[#allocation2 + $0x8] sm:$0xff] %vm21_vm3, %v1021_v17  ;;  %v1480_v31 = vmul.f32 %v2557_v60, %v2557_v60  ;;  %v1345_v39 = vsel %vm21_vm3, %v2557_v60, 0.0 }
  0xac   :  { %v870_v1 = vpop.f32.mrf.mxu1  ;;  %v2701_v21 = vpop.f32.mrf.mxu2 }
  0xad   :  { %1281 = vst.msk [vmem:[%s3539_s2] sm:$0xf] %vm1280_vm4, %v1216_v0  ;;  %v1544_v41 = vsel %vm21_vm3, %v1480_v31, 0.0 }
  0xae   :  { %v696_v3 = vpop.f32.mrf.mxu0 }
  0xaf   :  { %2016 = vmatmul.msk.bf16.gmra.mxu1 %vm578_vm2, %v1801_v61  ;;  %v866_v13 = vadd.f32 %v2506_v44, %v696_v3  ;;  %v2062_v61 = vld [vmem:[%s3537_s0 + $0xc4] sm:$0xf] }
  0xb1   :  { %735 = vmatmul.bf16.gmra.mxu0 %v1789_v2  ;;  %v1022_v22 = vadd.f32 %v866_v13, %v88_v14 }
  0xb2   :  { %v1153_v40 = vld [vmem:[#allocation2 + $0x8] sm:$0xff] }
  0xb3   :  { %1087 = vst.msk [vmem:[#allocation2 + $0x10] sm:$0xff] %vm21_vm3, %v1022_v22  ;;  %v1217_v42 = vpack.c.bf16 %v1153_v40, %v1153_v40  ;;  %v1346_v43 = vsel %vm21_vm3, %v1153_v40, 0.0  ;;  %v1481_v44 = vmul.f32 %v1153_v40, %v1153_v40  ;;  %v1916_v22 = vld [vmem:[%s3537_s0 + $0x190] sm:$0xf] }
  0xb4   :  { %v2603_v11 = vpop.f32.mrf.mxu1  ;;  %v1347_v47 = vadd.f32 %v1346_v43, %v1345_v39  ;;  %v776_v39 = vpop.f32.mrf.mxu2  ;;  %v120_v43 = vld [vmem:[#allocation2 + $0x110] sm:$0xff] }
  0xb5   :  { %1282 = vst.msk [vmem:[%s3539_s2 + $0x4] sm:$0xf] %vm1280_vm4, %v1217_v42  ;;  %v1545_v52 = vsel %vm21_vm3, %v1481_v44, 0.0  ;;  %v1822_v42 = vld [vmem:[%s3537_s0 + $0xd8] sm:$0xf0]  ;;  %v945_v44 = vpop.f32.mrf.mxu3 }
  0xb6   :  { %v698_v16 = vpop.f32.mrf.mxu0 }
  0xb7   :  { %v868_v18 = vadd.f32 %v867_v56, %v698_v16  ;;  %v1546_v56 = vadd.f32 %v1545_v52, %v1544_v41  ;;  %v1805_v16 = vor.u32 %v2061_v9, %v1804_v8  ;;  %v2064_v41 = vld [vmem:[%s3537_s0 + $0xd4] sm:$0xf]  ;;  %v1926_v8 = vld [vmem:[%s3537_s0 + $0x1a8] sm:$0xf0] }
  0xb9   :  { %v1023_v23 = vadd.f32 %v868_v18, %v89_v15  ;;  %v92_v18 = vld [vmem:[#allocation2 + $0x30] sm:$0xff] }
  0xba   :  { %v1154_v45 = vld [vmem:[#allocation2 + $0x10] sm:$0xff] }
  0xbb   :  { %1088 = vst.msk [vmem:[#allocation2 + $0x18] sm:$0xff] %vm21_vm3, %v1023_v23  ;;  %v1218_v48 = vpack.c.bf16 %v1154_v45, %v1154_v45  ;;  %v1348_v49 = vsel %vm21_vm3, %v1154_v45, 0.0  ;;  %v1482_v50 = vmul.f32 %v1154_v45, %v1154_v45  ;;  %v946_v45 = vadd.f32 %v945_v44, %v776_v39 }
  0xbc   :  { %v2634_v27 = vpop.f32.mrf.mxu1  ;;  %v1349_v57 = vadd.f32 %v1348_v49, %v1347_v47  ;;  %v1825_v49 = vor.u32 %v2064_v41, %v1822_v42 }
  0xbd   :  { %1283 = vst.msk [vmem:[%s3539_s2 + $0x8] sm:$0xf] %vm1280_vm4, %v1218_v48  ;;  %v1547_v58 = vsel %vm21_vm3, %v1482_v50, 0.0  ;;  %v1812_v50 = vld [vmem:[%s3537_s0 + $0xc0] sm:$0xf] }
  0xbe   :  { %v701_v29 = vpop.f32.mrf.mxu0  ;;  %v1548_v2 = vadd.f32 %v1547_v58, %v1546_v56 }
  0xbf   :  { %2017 = vmatmul.msk.bf16.gmra.mxu1 %vm578_vm2, %v1809_v24  ;;  %v871_v32 = vadd.f32 %v870_v1, %v701_v29  ;;  %v1814_v1 = vld [vmem:[%s3537_s0 + $0xc8] sm:$0xf0]  ;;  %v2089_v24 = vld [vmem:[%s3537_s0 + $0x194] sm:$0xf0] }
  0xc0   :  { %v1817_v7 = vor.u32 %v2062_v61, %v1814_v1 }
  0xc1   :  { %v1024_v38 = vadd.f32 %v871_v32, %v90_v20  ;;  %740 = vmatmul.bf16.gmra.mxu0 %v1797_v28  ;;  %v1917_v28 = vor.u32 %v2089_v24, %v1916_v22  ;;  %v1921_v20 = vor.u32 %v2088_v25, %v1918_v26  ;;  %v95_v24 = vld [vmem:[#allocation2 + $0x48] sm:$0xff] }
  0xc2   :  { %v1155_v51 = vld [vmem:[#allocation2 + $0x18] sm:$0xff] }
  0xc3   :  { %1089 = vst.msk [vmem:[#allocation2 + $0x20] sm:$0xff] %vm21_vm3, %v1024_v38  ;;  %v1219_v53 = vpack.c.bf16 %v1155_v51, %v1155_v51  ;;  %v1350_v54 = vsel %vm21_vm3, %v1155_v51, 0.0  ;;  %v1483_v55 = vmul.f32 %v1155_v51, %v1155_v51  ;;  %815 = vmatmul.bf16.gmra.mxu2 %v1917_v28  ;;  %2031 = vmatmul.msk.bf16.gmra.mxu3 %vm578_vm2, %v1921_v20  ;;  %v2066_v20 = vld [vmem:[%s3537_s0 + $0xe4] sm:$0xf] }
  0xc4   :  { %v2658_v46 = vpop.f32.mrf.mxu1  ;;  %v1351_v3 = vadd.f32 %v1350_v54, %v1349_v57  ;;  %v1054_v51 = vadd.f32 %v946_v45, %v120_v43 }
  0xc5   :  { %1284 = vst.msk [vmem:[%s3539_s2 + $0xc] sm:$0xf] %vm1280_vm4, %v1219_v53  ;;  %v1549_v63 = vsel %vm21_vm3, %v1483_v55, 0.0 }
  0xc6   :  { %v703_v60 = vpop.f32.mrf.mxu0  ;;  %v1550_v5 = vadd.f32 %v1549_v63, %v1548_v2  ;;  %1119 = vst.msk [vmem:[#allocation2 + $0x110] sm:$0xff] %vm21_vm3, %v1054_v51  ;;  %v778_v63 = vpop.f32.mrf.mxu2 }
  0xc7   :  { %v873_v0 = vadd.f32 %v2603_v11, %v703_v60  ;;  %v94_v60 = vld [vmem:[#allocation2 + $0x40] sm:$0xff]  ;;  %v947_v2 = vpop.f32.mrf.mxu3 }
  0xc9   :  { %v1025_v4 = vadd.f32 %v873_v0, %v91_v59  ;;  %v121_v0 = vld [vmem:[#allocation2 + $0x118] sm:$0xff] }
  0xca   :  { %v1156_v6 = vld [vmem:[#allocation2 + $0x20] sm:$0xff] }
  0xcb   :  { %v1220_v10 = vpack.c.bf16 %v1156_v6, %v1156_v6  ;;  %v1352_v11 = vsel %vm21_vm3, %v1156_v6, 0.0  ;;  %v1484_v12 = vmul.f32 %v1156_v6, %v1156_v6  ;;  %1090 = vst.msk [vmem:[#allocation2 + $0x28] sm:$0xff] %vm21_vm3, %v1025_v4  ;;  %v2091_v4 = vld [vmem:[%s3537_s0 + $0x1a4] sm:$0xf0]  ;;  %v948_v6 = vadd.f32 %v947_v2, %v778_v63 }
  0xcc   :  { %v880_v13 = vpop.f32.mrf.mxu1  ;;  %v1353_v14 = vadd.f32 %v1352_v11, %v1351_v3  ;;  %v1924_v3 = vld [vmem:[%s3537_s0 + $0x1a0] sm:$0xf] }
  0xcd   :  { %1285 = vst.msk [vmem:[%s3539_s2 + $0x10] sm:$0xf] %vm1280_vm4, %v1220_v10  ;;  %v1551_v15 = vsel %vm21_vm3, %v1484_v12, 0.0  ;;  %v1055_v12 = vadd.f32 %v948_v6, %v121_v0 }
  0xce   :  { %v1552_v17 = vadd.f32 %v1551_v15, %v1550_v5  ;;  %v706_v19 = vpop.f32.mrf.mxu0  ;;  %v2090_v5 = vld [vmem:[%s3537_s0 + $0x1a4] sm:$0xf]  ;;  %v781_v26 = vpop.f32.mrf.mxu2 }
  0xcf   :  { %2018 = vmatmul.msk.bf16.gmra.mxu1 %vm578_vm2, %v1817_v7  ;;  %v876_v23 = vadd.f32 %v2634_v27, %v706_v19  ;;  %v1925_v7 = vor.u32 %v2091_v4, %v1924_v3  ;;  %v1929_v10 = vor.u32 %v2090_v5, %v1926_v8  ;;  %1120 = vst.msk [vmem:[#allocation2 + $0x118] sm:$0xff] %vm21_vm3, %v1055_v12 }
  0xd1   :  { %v1026_v29 = vadd.f32 %v876_v23, %v92_v18  ;;  %745 = vmatmul.bf16.gmra.mxu0 %v1805_v16 }
  0xd2   :  { %v1157_v30 = vld [vmem:[#allocation2 + $0x28] sm:$0xff] }
  0xd3   :  { %v1221_v31 = vpack.c.bf16 %v1157_v30, %v1157_v30  ;;  %v1354_v27 = vsel %vm21_vm3, %v1157_v30, 0.0  ;;  %v1485_v32 = vmul.f32 %v1157_v30, %v1157_v30  ;;  %1091 = vst.msk [vmem:[#allocation2 + $0x30] sm:$0xff] %vm21_vm3, %v1026_v29  ;;  %820 = vmatmul.bf16.gmra.mxu2 %v1925_v7  ;;  %2032 = vmatmul.msk.bf16.gmra.mxu3 %vm578_vm2, %v1929_v10  ;;  %v1830_v29 = vld [vmem:[%s3537_s0 + $0xe8] sm:$0xf0]  ;;  %v122_v30 = vld [vmem:[#allocation2 + $0x120] sm:$0xff]  ;;  %v97_v10 = vld [vmem:[#allocation2 + $0x58] sm:$0xff] }
  0xd4   :  { %v2718_v33 = vpop.f32.mrf.mxu1  ;;  %v1355_v34 = vadd.f32 %v1354_v27, %v1353_v14 }
  0xd5   :  { %1286 = vst.msk [vmem:[%s3539_s2 + $0x14] sm:$0xf] %vm1280_vm4, %v1221_v31  ;;  %v1553_v35 = vsel %vm21_vm3, %v1485_v32, 0.0  ;;  %v950_v31 = vpop.f32.mrf.mxu3 }
  0xd6   :  { %v1554_v36 = vadd.f32 %v1553_v35, %v1552_v17  ;;  %v708_v38 = vpop.f32.mrf.mxu0  ;;  %v1186_v17 = vld [vmem:[#allocation2 + $0x110] sm:$0xff]  ;;  %v951_v27 = vadd.f32 %v950_v31, %v781_v26  ;;  %v1833_v35 = vor.u32 %v2066_v20, %v1830_v29  ;;  %v1187_v42 = vld [vmem:[#allocation2 + $0x118] sm:$0xff] }
  0xd7   :  { %v878_v40 = vadd.f32 %v2658_v46, %v708_v38  ;;  %v2063_v46 = vld [vmem:[%s3537_s0 + $0xc4] sm:$0xf0]  ;;  %v1250_v19 = vpack.c.bf16 %v1186_v17, %v1186_v17  ;;  %v1251_v44 = vpack.c.bf16 %v1187_v42, %v1187_v42  ;;  %v124_v17 = vld [vmem:[#allocation2 + $0x130] sm:$0xff] }
  0xd8   :  { %v1813_v58 = vor.u32 %v2063_v46, %v1812_v50  ;;  %v783_v46 = vpop.f32.mrf.mxu2 }
  0xd9   :  { %v1027_v47 = vadd.f32 %v878_v40, %v93_v37  ;;  %1315 = vst.msk [vmem:[%s3539_s2 + $0x88] sm:$0xf] %vm1280_vm4, %v1250_v19  ;;  %v1056_v37 = vadd.f32 %v951_v27, %v122_v30 }
  0xda   :  { %v1158_v48 = vld [vmem:[#allocation2 + $0x30] sm:$0xff]  ;;  %1316 = vst.msk [vmem:[%s3539_s2 + $0x8c] sm:$0xf] %vm1280_vm4, %v1251_v44  ;;  %v2095_v44 = vld [vmem:[%s3537_s0 + $0x1c4] sm:$0xf0] }
  0xdb   :  { %v1222_v52 = vpack.c.bf16 %v1158_v48, %v1158_v48  ;;  %v1356_v53 = vsel %vm21_vm3, %v1158_v48, 0.0  ;;  %v1486_v54 = vmul.f32 %v1158_v48, %v1158_v48  ;;  %1092 = vst.msk [vmem:[#allocation2 + $0x38] sm:$0xff] %vm21_vm3, %v1027_v47 }
  0xdc   :  { %v2741_v55 = vpop.f32.mrf.mxu1  ;;  %v1357_v56 = vadd.f32 %v1356_v53, %v1355_v34  ;;  %1121 = vst.msk [vmem:[#allocation2 + $0x120] sm:$0xff] %vm21_vm3, %v1056_v37 }
  0xdd   :  { %1287 = vst.msk [vmem:[%s3539_s2 + $0x18] sm:$0xf] %vm1280_vm4, %v1222_v52  ;;  %v1555_v57 = vsel %vm21_vm3, %v1486_v54, 0.0  ;;  %v123_v52 = vld [vmem:[#allocation2 + $0x128] sm:$0xff]  ;;  %v952_v53 = vpop.f32.mrf.mxu3  ;;  %v1932_v54 = vld [vmem:[%s3537_s0 + $0x1b0] sm:$0xf] }
  0xde   :  { %v1556_v59 = vadd.f32 %v1555_v57, %v1554_v36  ;;  %v711_v61 = vpop.f32.mrf.mxu0  ;;  %v1820_v36 = vld [vmem:[%s3537_s0 + $0xd0] sm:$0xf]  ;;  %v953_v57 = vadd.f32 %v952_v53, %v783_v46 }
  0xdf   :  { %2019 = vmatmul.msk.bf16.gmra.mxu1 %vm578_vm2, %v1825_v49  ;;  %v881_v1 = vadd.f32 %v880_v13, %v711_v61  ;;  %v96_v49 = vld [vmem:[#allocation2 + $0x50] sm:$0xff] }
  0xe0   :  { %v1057_v0 = vadd.f32 %v953_v57, %v123_v52  ;;  %v786_v12 = vpop.f32.mrf.mxu2 }
  0xe1   :  { %v1028_v9 = vadd.f32 %v881_v1, %v94_v60  ;;  %750 = vmatmul.bf16.gmra.mxu0 %v1813_v58 }
  0xe2   :  { %v1159_v11 = vld [vmem:[#allocation2 + $0x38] sm:$0xff]  ;;  %1122 = vst.msk [vmem:[#allocation2 + $0x128] sm:$0xff] %vm21_vm3, %v1057_v0 }
  0xe3   :  { %v1223_v13 = vpack.c.bf16 %v1159_v11, %v1159_v11  ;;  %v1358_v14 = vsel %vm21_vm3, %v1159_v11, 0.0  ;;  %v1487_v15 = vmul.f32 %v1159_v11, %v1159_v11  ;;  %1093 = vst.msk [vmem:[#allocation2 + $0x40] sm:$0xff] %vm21_vm3, %v1028_v9  ;;  %v1188_v5 = vld [vmem:[#allocation2 + $0x120] sm:$0xff] }
  0xe4   :  { %v2764_v16 = vpop.f32.mrf.mxu1  ;;  %v1359_v18 = vadd.f32 %v1358_v14, %v1357_v56  ;;  %v2093_v56 = vld [vmem:[%s3537_s0 + $0x1b4] sm:$0xf0]  ;;  %v1252_v7 = vpack.c.bf16 %v1188_v5, %v1188_v5  ;;  %v2068_v14 = vld [vmem:[%s3537_s0 + $0xf4] sm:$0xf]  ;;  %v126_v5 = vld [vmem:[#allocation2 + $0x140] sm:$0xff] }
  0xe5   :  { %1288 = vst.msk [vmem:[%s3539_s2 + $0x1c] sm:$0xf] %vm1280_vm4, %v1223_v13  ;;  %v1557_v22 = vsel %vm21_vm3, %v1487_v15, 0.0  ;;  %v1933_v58 = vor.u32 %v2093_v56, %v1932_v54  ;;  %v1838_v15 = vld [vmem:[%s3537_s0 + $0xf8] sm:$0xf0] }
  0xe6   :  { %v1558_v23 = vadd.f32 %v1557_v22, %v1556_v59  ;;  %v713_v25 = vpop.f32.mrf.mxu0  ;;  %v2092_v59 = vld [vmem:[%s3537_s0 + $0x1b4] sm:$0xf]  ;;  %1317 = vst.msk [vmem:[%s3539_s2 + $0x90] sm:$0xf] %vm1280_vm4, %v1252_v7 }
  0xe7   :  { %v883_v28 = vadd.f32 %v2718_v33, %v713_v25  ;;  %v2065_v33 = vld [vmem:[%s3537_s0 + $0xd4] sm:$0xf0]  ;;  %825 = vmatmul.bf16.gmra.mxu2 %v1933_v58  ;;  %v1828_v25 = vld [vmem:[%s3537_s0 + $0xe0] sm:$0xf] }
  0xe8   :  { %v1821_v47 = vor.u32 %v2065_v33, %v1820_v36  ;;  %v98_v33 = vld [vmem:[#allocation2 + $0x60] sm:$0xff] }
  0xe9   :  { %v1029_v32 = vadd.f32 %v883_v28, %v95_v24  ;;  %v1841_v24 = vor.u32 %v2068_v14, %v1838_v15  ;;  %v1189_v31 = vld [vmem:[#allocation2 + $0x128] sm:$0xff] }
  0xea   :  { %v1160_v34 = vld [vmem:[#allocation2 + $0x40] sm:$0xff] }
  0xeb   :  { %v1224_v38 = vpack.c.bf16 %v1160_v34, %v1160_v34  ;;  %v1360_v39 = vsel %vm21_vm3, %v1160_v34, 0.0  ;;  %v1488_v40 = vmul.f32 %v1160_v34, %v1160_v34  ;;  %1094 = vst.msk [vmem:[#allocation2 + $0x48] sm:$0xff] %vm21_vm3, %v1029_v32  ;;  %v1253_v32 = vpack.c.bf16 %v1189_v31, %v1189_v31 }
  0xec   :  { %v2792_v41 = vpop.f32.mrf.mxu1  ;;  %v1361_v43 = vadd.f32 %v1360_v39, %v1359_v18  ;;  %v955_v18 = vpop.f32.mrf.mxu3 }
  0xed   :  { %1289 = vst.msk [vmem:[%s3539_s2 + $0x20] sm:$0xf] %vm1280_vm4, %v1224_v38  ;;  %v1559_v45 = vsel %vm21_vm3, %v1488_v40, 0.0  ;;  %v956_v19 = vadd.f32 %v955_v18, %v786_v12  ;;  %v788_v38 = vpop.f32.mrf.mxu2  ;;  %v125_v40 = vld [vmem:[#allocation2 + $0x138] sm:$0xff] }
  0xee   :  { %v1560_v48 = vadd.f32 %v1559_v45, %v1558_v23  ;;  %v716_v50 = vpop.f32.mrf.mxu0  ;;  %1318 = vst.msk [vmem:[%s3539_s2 + $0x94] sm:$0xf] %vm1280_vm4, %v1253_v32  ;;  %v2097_v32 = vld [vmem:[%s3537_s0 + $0x1d4] sm:$0xf0] }
  0xef   :  { %2020 = vmatmul.msk.bf16.gmra.mxu1 %vm578_vm2, %v1833_v35  ;;  %v886_v51 = vadd.f32 %v2741_v55, %v716_v50  ;;  %v1934_v55 = vld [vmem:[%s3537_s0 + $0x1b8] sm:$0xf0]  ;;  %v1058_v26 = vadd.f32 %v956_v19, %v124_v17 }
  0xf0   :  { %v1937_v61 = vor.u32 %v2092_v59, %v1934_v55 }
  0xf1   :  { %v1030_v60 = vadd.f32 %v886_v51, %v96_v49  ;;  %755 = vmatmul.bf16.gmra.mxu0 %v1821_v47  ;;  %1123 = vst.msk [vmem:[#allocation2 + $0x130] sm:$0xff] %vm21_vm3, %v1058_v26 }
  0xf2   :  { %v1161_v63 = vld [vmem:[#allocation2 + $0x48] sm:$0xff]  ;;  %2033 = vmatmul.msk.bf16.gmra.mxu3 %vm578_vm2, %v1937_v61 }
  0xf3   :  { %v1225_v1 = vpack.c.bf16 %v1161_v63, %v1161_v63  ;;  %v1362_v2 = vsel %vm21_vm3, %v1161_v63, 0.0  ;;  %v1489_v3 = vmul.f32 %v1161_v63, %v1161_v63  ;;  %1095 = vst.msk [vmem:[#allocation2 + $0x50] sm:$0xff] %vm21_vm3, %v1030_v60  ;;  %v99_v61 = vld [vmem:[#allocation2 + $0x68] sm:$0xff] }
  0xf4   :  { %v2820_v4 = vpop.f32.mrf.mxu1  ;;  %v1363_v6 = vadd.f32 %v1362_v2, %v1361_v43  ;;  %v957_v42 = vpop.f32.mrf.mxu3  ;;  %v1940_v43 = vld [vmem:[%s3537_s0 + $0x1c0] sm:$0xf]  ;;  %v2070_v2 = vld [vmem:[%s3537_s0 + $0x104] sm:$0xf] }
  0xf5   :  { %1290 = vst.msk [vmem:[%s3539_s2 + $0x24] sm:$0xf] %vm1280_vm4, %v1225_v1  ;;  %v1561_v8 = vsel %vm21_vm3, %v1489_v3, 0.0  ;;  %v958_v45 = vadd.f32 %v957_v42, %v788_v38  ;;  %v1941_v47 = vor.u32 %v2095_v44, %v1940_v43  ;;  %v791_v0 = vpop.f32.mrf.mxu2  ;;  %v1846_v3 = vld [vmem:[%s3537_s0 + $0x108] sm:$0xf0] }
  0xf6   :  { %v1562_v9 = vadd.f32 %v1561_v8, %v1560_v48  ;;  %v718_v11 = vpop.f32.mrf.mxu0  ;;  %v2094_v48 = vld [vmem:[%s3537_s0 + $0x1c4] sm:$0xf] }
  0xf7   :  { %v888_v13 = vadd.f32 %v2764_v16, %v718_v11  ;;  %v2067_v16 = vld [vmem:[%s3537_s0 + $0xe4] sm:$0xf0]  ;;  %v1059_v51 = vadd.f32 %v958_v45, %v125_v40  ;;  %830 = vmatmul.bf16.gmra.mxu2 %v1941_v47  ;;  %v1836_v11 = vld [vmem:[%s3537_s0 + $0xf0] sm:$0xf] }
  0xf8   :  { %v1829_v35 = vor.u32 %v2067_v16, %v1828_v25  ;;  %v1190_v57 = vld [vmem:[#allocation2 + $0x130] sm:$0xff] }
  0xf9   :  { %v1031_v22 = vadd.f32 %v888_v13, %v97_v10  ;;  %v1254_v59 = vpack.c.bf16 %v1190_v57, %v1190_v57  ;;  %1124 = vst.msk [vmem:[#allocation2 + $0x138] sm:$0xff] %vm21_vm3, %v1059_v51  ;;  %v1849_v10 = vor.u32 %v2070_v2, %v1846_v3  ;;  %v100_v16 = vld [vmem:[#allocation2 + $0x70] sm:$0xff] }
  0xfa   :  { %v1162_v23 = vld [vmem:[#allocation2 + $0x50] sm:$0xff] }
  0xfb   :  { %v1226_v28 = vpack.c.bf16 %v1162_v23, %v1162_v23  ;;  %v1364_v20 = vsel %vm21_vm3, %v1162_v23, 0.0  ;;  %v1490_v29 = vmul.f32 %v1162_v23, %v1162_v23  ;;  %1096 = vst.msk [vmem:[#allocation2 + $0x58] sm:$0xff] %vm21_vm3, %v1031_v22 }
  0xfc   :  { %v2848_v30 = vpop.f32.mrf.mxu1  ;;  %v1365_v27 = vadd.f32 %v1364_v20, %v1363_v6  ;;  %1319 = vst.msk [vmem:[%s3539_s2 + $0x98] sm:$0xf] %vm1280_vm4, %v1254_v59  ;;  %v960_v6 = vpop.f32.mrf.mxu3  ;;  %v127_v20 = vld [vmem:[#allocation2 + $0x148] sm:$0xff] }
  0xfd   :  { %1291 = vst.msk [vmem:[%s3539_s2 + $0x28] sm:$0xf] %vm1280_vm4, %v1226_v28  ;;  %v1563_v34 = vsel %vm21_vm3, %v1490_v29, 0.0  ;;  %v961_v7 = vadd.f32 %v960_v6, %v791_v0  ;;  %v793_v28 = vpop.f32.mrf.mxu2  ;;  %v1948_v29 = vld [vmem:[%s3537_s0 + $0x1d0] sm:$0xf]  ;;  %v102_v6 = vld [vmem:[#allocation2 + $0x80] sm:$0xff] }
  0xfe   :  { %v1564_v36 = vadd.f32 %v1563_v34, %v1562_v9  ;;  %v721_v37 = vpop.f32.mrf.mxu0  ;;  %v2096_v34 = vld [vmem:[%s3537_s0 + $0x1d4] sm:$0xf] }
  0xff   :  { %2021 = vmatmul.msk.bf16.gmra.mxu1 %vm578_vm2, %v1841_v24  ;;  %v891_v39 = vadd.f32 %v2792_v41, %v721_v37  ;;  %v1942_v41 = vld [vmem:[%s3537_s0 + $0x1c8] sm:$0xf0]  ;;  %v1060_v12 = vadd.f32 %v961_v7, %v126_v5 }
 0x100   :  { %v1945_v50 = vor.u32 %v2094_v48, %v1942_v41  ;;  %v1191_v18 = vld [vmem:[#allocation2 + $0x138] sm:$0xff] }
 0x101   :  { %v1032_v49 = vadd.f32 %v891_v39, %v98_v33  ;;  %760 = vmatmul.bf16.gmra.mxu0 %v1829_v35  ;;  %v1255_v22 = vpack.c.bf16 %v1191_v18, %v1191_v18  ;;  %1125 = vst.msk [vmem:[#allocation2 + $0x140] sm:$0xff] %vm21_vm3, %v1060_v12  ;;  %v1950_v35 = vld [vmem:[%s3537_s0 + $0x1d8] sm:$0xf0]  ;;  %v1949_v33 = vor.u32 %v2097_v32, %v1948_v29  ;;  %v2099_v12 = vld [vmem:[%s3537_s0 + $0x1e4] sm:$0xf0] }
 0x102   :  { %v1163_v46 = vld [vmem:[#allocation2 + $0x58] sm:$0xff]  ;;  %2034 = vmatmul.msk.bf16.gmra.mxu3 %vm578_vm2, %v1945_v50  ;;  %v1953_v37 = vor.u32 %v2096_v34, %v1950_v35  ;;  %v103_v32 = vld [vmem:[#allocation2 + $0x88] sm:$0xff] }
 0x103   :  { %v1227_v52 = vpack.c.bf16 %v1163_v46, %v1163_v46  ;;  %v1366_v53 = vsel %vm21_vm3, %v1163_v46, 0.0  ;;  %v1491_v54 = vmul.f32 %v1163_v46, %v1163_v46  ;;  %1097 = vst.msk [vmem:[#allocation2 + $0x60] sm:$0xff] %vm21_vm3, %v1032_v49  ;;  %v101_v50 = vld [vmem:[#allocation2 + $0x78] sm:$0xff] }
 0x104   :  { %v2876_v56 = vpop.f32.mrf.mxu1  ;;  %v1367_v58 = vadd.f32 %v1366_v53, %v1365_v27  ;;  %1320 = vst.msk [vmem:[%s3539_s2 + $0x9c] sm:$0xf] %vm1280_vm4, %v1255_v22  ;;  %v962_v27 = vpop.f32.mrf.mxu3  ;;  %v128_v53 = vld [vmem:[#allocation2 + $0x150] sm:$0xff] }
 0x105   :  { %1292 = vst.msk [vmem:[%s3539_s2 + $0x2c] sm:$0xf] %vm1280_vm4, %v1227_v52  ;;  %v1565_v55 = vsel %vm21_vm3, %v1491_v54, 0.0  ;;  %v796_v51 = vpop.f32.mrf.mxu2 }
 0x106   :  { %v1566_v60 = vadd.f32 %v1565_v55, %v1564_v36  ;;  %v723_v63 = vpop.f32.mrf.mxu0  ;;  %v963_v36 = vadd.f32 %v962_v27, %v793_v28 }
 0x107   :  { %v893_v1 = vadd.f32 %v2820_v4, %v723_v63  ;;  %v2069_v4 = vld [vmem:[%s3537_s0 + $0xf4] sm:$0xf0]  ;;  %835 = vmatmul.bf16.gmra.mxu2 %v1949_v33  ;;  %v130_v33 = vld [vmem:[#allocation2 + $0x160] sm:$0xff] }
 0x108   :  { %v1837_v24 = vor.u32 %v2069_v4, %v1836_v11  ;;  %v2934_v45 = vld [vmem:[#allocation2 + $0x140] sm:$0xff] }
 0x109   :  { %v1033_v8 = vadd.f32 %v893_v1, %v99_v61  ;;  %v1256_v48 = vpack.c.bf16 %v2934_v45, %v2934_v45 }
 0x10a   :  { %v1164_v9 = vld [vmem:[#allocation2 + $0x60] sm:$0xff] }
 0x10b   :  { %v1228_v13 = vpack.c.bf16 %v1164_v9, %v1164_v9  ;;  %v1368_v14 = vsel %vm21_vm3, %v1164_v9, 0.0  ;;  %v1492_v15 = vmul.f32 %v1164_v9, %v1164_v9  ;;  %1098 = vst.msk [vmem:[#allocation2 + $0x68] sm:$0xff] %vm21_vm3, %v1033_v8  ;;  %v129_v9 = vld [vmem:[#allocation2 + $0x158] sm:$0xff] }
 0x10c   :  { %v2904_v17 = vpop.f32.mrf.mxu1  ;;  %v1369_v19 = vadd.f32 %v1368_v14, %v1367_v58  ;;  %1321 = vst.msk [vmem:[%s3539_s2 + $0xa0] sm:$0xf] %vm1280_vm4, %v1256_v48  ;;  %v965_v54 = vpop.f32.mrf.mxu3  ;;  %v1958_v14 = vld [vmem:[%s3537_s0 + $0x1e8] sm:$0xf0] }
 0x10d   :  { %1293 = vst.msk [vmem:[%s3539_s2 + $0x30] sm:$0xf] %vm1280_vm4, %v1228_v13  ;;  %v1567_v23 = vsel %vm21_vm3, %v1492_v15, 0.0  ;;  %v966_v57 = vadd.f32 %v965_v54, %v796_v51  ;;  %v798_v8 = vpop.f32.mrf.mxu2  ;;  %v2098_v13 = vld [vmem:[%s3537_s0 + $0x1e4] sm:$0xf]  ;;  %v104_v51 = vld [vmem:[#allocation2 + $0x90] sm:$0xff] }
 0x10e   :  { %v1568_v25 = vadd.f32 %v1567_v23, %v1566_v60  ;;  %v726_v26 = vpop.f32.mrf.mxu0  ;;  %v131_v54 = vld [vmem:[#allocation2 + $0x168] sm:$0xff] }
 0x10f   :  { %2022 = vmatmul.msk.bf16.gmra.mxu1 %vm578_vm2, %v1849_v10  ;;  %v896_v31 = vadd.f32 %v2848_v30, %v726_v26  ;;  %v1061_v30 = vadd.f32 %v963_v36, %v127_v20  ;;  %v1062_v55 = vadd.f32 %v966_v57, %v128_v53  ;;  %v1956_v10 = vld [vmem:[%s3537_s0 + $0x1e0] sm:$0xf]  ;;  %v1964_v57 = vld [vmem:[%s3537_s0 + $0x1f0] sm:$0xf] }
 0x110   :  { %v1957_v18 = vor.u32 %v2099_v12, %v1956_v10 }
 0x111   :  { %v1034_v38 = vadd.f32 %v896_v31, %v100_v16  ;;  %765 = vmatmul.bf16.gmra.mxu0 %v1837_v24  ;;  %1126 = vst.msk [vmem:[#allocation2 + $0x148] sm:$0xff] %vm21_vm3, %v1061_v30 }
 0x112   :  { %v1165_v39 = vld [vmem:[#allocation2 + $0x68] sm:$0xff]  ;;  %2035 = vmatmul.msk.bf16.gmra.mxu3 %vm578_vm2, %v1953_v37  ;;  %1127 = vst.msk [vmem:[#allocation2 + $0x150] sm:$0xff] %vm21_vm3, %v1062_v55  ;;  %v2101_v55 = vld [vmem:[%s3537_s0 + $0x1f4] sm:$0xf0] }
 0x113   :  { %v1229_v40 = vpack.c.bf16 %v1165_v39, %v1165_v39  ;;  %v1370_v42 = vsel %vm21_vm3, %v1165_v39, 0.0  ;;  %v1493_v43 = vmul.f32 %v1165_v39, %v1165_v39  ;;  %1099 = vst.msk [vmem:[#allocation2 + $0x70] sm:$0xff] %vm21_vm3, %v1034_v38 }
 0x114   :  { %v2932_v44 = vpop.f32.mrf.mxu1  ;;  %v1371_v47 = vadd.f32 %v1370_v42, %v1369_v19  ;;  %v967_v4 = vpop.f32.mrf.mxu3  ;;  %v1961_v19 = vor.u32 %v2098_v13, %v1958_v14  ;;  %v105_v14 = vld [vmem:[#allocation2 + $0x98] sm:$0xff] }
 0x115   :  { %1294 = vst.msk [vmem:[%s3539_s2 + $0x34] sm:$0xf] %vm1280_vm4, %v1229_v40  ;;  %v1569_v41 = vsel %vm21_vm3, %v1493_v43, 0.0  ;;  %v968_v15 = vadd.f32 %v967_v4, %v798_v8  ;;  %v801_v35 = vpop.f32.mrf.mxu2 }
 0x116   :  { %v1570_v49 = vadd.f32 %v1569_v41, %v1568_v25  ;;  %v728_v46 = vpop.f32.mrf.mxu0 }
 0x117   :  { %v898_v52 = vadd.f32 %v2876_v56, %v728_v46  ;;  %v1063_v24 = vadd.f32 %v968_v15, %v129_v9  ;;  %840 = vmatmul.bf16.gmra.mxu2 %v1957_v18 }
 0x118   :  { %v2954_v1 = vld [vmem:[#allocation2 + $0x148] sm:$0xff] }
 0x119   :  { %v1035_v58 = vadd.f32 %v898_v52, %v101_v50  ;;  %v1257_v56 = vpack.c.bf16 %v2954_v1, %v2954_v1  ;;  %v2985_v28 = vld [vmem:[#allocation2 + $0x150] sm:$0xff]  ;;  %1128 = vst.msk [vmem:[#allocation2 + $0x158] sm:$0xff] %vm21_vm3, %v1063_v24 }
 0x11a   :  { %v1166_v59 = vld [vmem:[#allocation2 + $0x70] sm:$0xff]  ;;  %v1258_v29 = vpack.c.bf16 %v2985_v28, %v2985_v28 }
 0x11b   :  { %v1230_v60 = vpack.c.bf16 %v1166_v59, %v1166_v59  ;;  %v1372_v61 = vsel %vm21_vm3, %v1166_v59, 0.0  ;;  %v1494_v63 = vmul.f32 %v1166_v59, %v1166_v59  ;;  %1100 = vst.msk [vmem:[#allocation2 + $0x78] sm:$0xff] %vm21_vm3, %v1035_v58 }
 0x11c   :  { %v2952_v0 = vpop.f32.mrf.mxu1  ;;  %v1373_v2 = vadd.f32 %v1372_v61, %v1371_v47  ;;  %1322 = vst.msk [vmem:[%s3539_s2 + $0xa4] sm:$0xf] %vm1280_vm4, %v1257_v56  ;;  %v970_v37 = vpop.f32.mrf.mxu3  ;;  %v1966_v61 = vld [vmem:[%s3537_s0 + $0x1f8] sm:$0xf0] }
 0x11d   :  { %1295 = vst.msk [vmem:[%s3539_s2 + $0x38] sm:$0xf] %vm1280_vm4, %v1230_v60  ;;  %v1571_v3 = vsel %vm21_vm3, %v1494_v63, 0.0  ;;  %v971_v38 = vadd.f32 %v970_v37, %v801_v35  ;;  %v803_v53 = vpop.f32.mrf.mxu2  ;;  %v2100_v60 = vld [vmem:[%s3537_s0 + $0x1f4] sm:$0xf] }
 0x11e   :  { %v1572_v5 = vadd.f32 %v1571_v3, %v1570_v49  ;;  %v731_v7 = vpop.f32.mrf.mxu0  ;;  %1323 = vst.msk [vmem:[%s3539_s2 + $0xa8] sm:$0xf] %vm1280_vm4, %v1258_v29  ;;  %v1969_v56 = vor.u32 %v2100_v60, %v1966_v61  ;;  %v134_v61 = vld [vmem:[#allocation2 + $0x180] sm:$0xff] }
 0x11f   :  { %v901_v11 = vadd.f32 %v2904_v17, %v731_v7  ;;  %v1064_v40 = vadd.f32 %v971_v38, %v130_v33  ;;  %v106_v33 = vld [vmem:[#allocation2 + $0xa0] sm:$0xff] }
 0x120   :  { %v3005_v41 = vld [vmem:[#allocation2 + $0x158] sm:$0xff] }
 0x121   :  { %v1036_v22 = vadd.f32 %v901_v11, %v102_v6  ;;  %1129 = vst.msk [vmem:[#allocation2 + $0x160] sm:$0xff] %vm21_vm3, %v1064_v40 }
 0x122   :  { %v1167_v23 = vld [vmem:[#allocation2 + $0x78] sm:$0xff]  ;;  %2036 = vmatmul.msk.bf16.gmra.mxu3 %vm578_vm2, %v1961_v19 }
 0x123   :  { %v1231_v17 = vpack.c.bf16 %v1167_v23, %v1167_v23  ;;  %v1374_v25 = vsel %vm21_vm3, %v1167_v23, 0.0  ;;  %v1495_v16 = vmul.f32 %v1167_v23, %v1167_v23  ;;  %1101 = vst.msk [vmem:[#allocation2 + $0x80] sm:$0xff] %vm21_vm3, %v1036_v22  ;;  %v132_v22 = vld [vmem:[#allocation2 + $0x170] sm:$0xff] }
 0x124   :  { %v2983_v26 = vpop.f32.mrf.mxu1  ;;  %v1375_v20 = vadd.f32 %v1374_v25, %v1373_v2  ;;  %v972_v59 = vpop.f32.mrf.mxu3  ;;  %v1965_v2 = vor.u32 %v2101_v55, %v1964_v57 }
 0x125   :  { %1296 = vst.msk [vmem:[%s3539_s2 + $0x3c] sm:$0xf] %vm1280_vm4, %v1231_v17  ;;  %v1573_v31 = vsel %vm21_vm3, %v1495_v16, 0.0  ;;  %v973_v63 = vadd.f32 %v972_v59, %v803_v53  ;;  %v806_v18 = vpop.f32.mrf.mxu2 }
 0x126   :  { %v1574_v27 = vadd.f32 %v1573_v31, %v1572_v5  ;;  %v733_v34 = vpop.f32.mrf.mxu0 }
 0x127   :  { %v903_v36 = vadd.f32 %v2932_v44, %v733_v34  ;;  %v1259_v44 = vpack.c.bf16 %v3005_v41, %v3005_v41  ;;  %v1065_v6 = vadd.f32 %v973_v63, %v131_v54  ;;  %845 = vmatmul.bf16.gmra.mxu2 %v1965_v2 }
 0x128   :  { %v3034_v10 = vld [vmem:[#allocation2 + $0x160] sm:$0xff] }
 0x129   :  { %v1037_v39 = vadd.f32 %v903_v36, %v103_v32  ;;  %1324 = vst.msk [vmem:[%s3539_s2 + $0xac] sm:$0xf] %vm1280_vm4, %v1259_v44  ;;  %v1260_v4 = vpack.c.bf16 %v3034_v10, %v3034_v10 }
 0x12a   :  { %v1168_v30 = vld [vmem:[#allocation2 + $0x80] sm:$0xff]  ;;  %1130 = vst.msk [vmem:[#allocation2 + $0x168] sm:$0xff] %vm21_vm3, %v1065_v6 }
 0x12b   :  { %v1232_v42 = vpack.c.bf16 %v1168_v30, %v1168_v30  ;;  %v1376_v43 = vsel %vm21_vm3, %v1168_v30, 0.0  ;;  %v1496_v47 = vmul.f32 %v1168_v30, %v1168_v30  ;;  %1102 = vst.msk [vmem:[#allocation2 + $0x88] sm:$0xff] %vm21_vm3, %v1037_v39  ;;  %v133_v30 = vld [vmem:[#allocation2 + $0x178] sm:$0xff] }
 0x12c   :  { %v3003_v48 = vpop.f32.mrf.mxu1  ;;  %v1377_v49 = vadd.f32 %v1376_v43, %v1375_v20  ;;  %1325 = vst.msk [vmem:[%s3539_s2 + $0xb0] sm:$0xf] %vm1280_vm4, %v1260_v4  ;;  %v975_v23 = vpop.f32.mrf.mxu3 }
 0x12d   :  { %1297 = vst.msk [vmem:[%s3539_s2 + $0x40] sm:$0xf] %vm1280_vm4, %v1232_v42  ;;  %v1575_v50 = vsel %vm21_vm3, %v1496_v47, 0.0  ;;  %v976_v24 = vadd.f32 %v975_v23, %v806_v18  ;;  %v808_v38 = vpop.f32.mrf.mxu2 }
 0x12e   :  { %v1576_v46 = vadd.f32 %v1575_v50, %v1574_v27  ;;  %v736_v52 = vpop.f32.mrf.mxu0 }
 0x12f   :  { %v906_v58 = vadd.f32 %v2952_v0, %v736_v52  ;;  %v1066_v16 = vadd.f32 %v976_v24, %v132_v22  ;;  %v135_v22 = vld [vmem:[#allocation2 + $0x188] sm:$0xff] }
 0x131   :  { %v1038_v3 = vadd.f32 %v906_v58, %v104_v51  ;;  %v3052_v32 = vld [vmem:[#allocation2 + $0x168] sm:$0xff]  ;;  %1131 = vst.msk [vmem:[#allocation2 + $0x170] sm:$0xff] %vm21_vm3, %v1066_v16 }
 0x132   :  { %v1169_v5 = vld [vmem:[#allocation2 + $0x88] sm:$0xff]  ;;  %2037 = vmatmul.msk.bf16.gmra.mxu3 %vm578_vm2, %v1969_v56  ;;  %v1261_v35 = vpack.c.bf16 %v3052_v32, %v3052_v32 }
 0x133   :  { %v1233_v0 = vpack.c.bf16 %v1169_v5, %v1169_v5  ;;  %v1378_v7 = vsel %vm21_vm3, %v1169_v5, 0.0  ;;  %v1497_v8 = vmul.f32 %v1169_v5, %v1169_v5  ;;  %1103 = vst.msk [vmem:[#allocation2 + $0x90] sm:$0xff] %vm21_vm3, %v1038_v3  ;;  %v107_v58 = vld [vmem:[#allocation2 + $0xa8] sm:$0xff] }
 0x134   :  { %v912_v9 = vpop.f32.mrf.mxu1  ;;  %v1379_v11 = vadd.f32 %v1378_v7, %v1377_v49  ;;  %1326 = vst.msk [vmem:[%s3539_s2 + $0xb4] sm:$0xf] %vm1280_vm4, %v1261_v35  ;;  %v977_v40 = vpop.f32.mrf.mxu3 }
 0x135   :  { %1298 = vst.msk [vmem:[%s3539_s2 + $0x44] sm:$0xf] %vm1280_vm4, %v1233_v0  ;;  %v1577_v12 = vsel %vm21_vm3, %v1497_v8, 0.0  ;;  %v978_v42 = vadd.f32 %v977_v40, %v808_v38  ;;  %v811_v55 = vpop.f32.mrf.mxu2 }
 0x136   :  { %v1578_v13 = vadd.f32 %v1577_v12, %v1576_v46  ;;  %v738_v15 = vpop.f32.mrf.mxu0 }
 0x137   :  { %v908_v19 = vadd.f32 %v2983_v26, %v738_v15  ;;  %v1067_v49 = vadd.f32 %v978_v42, %v133_v30 }
 0x138   :  { %v3069_v52 = vld [vmem:[#allocation2 + $0x170] sm:$0xff] }
 0x139   :  { %v1039_v17 = vadd.f32 %v908_v19, %v105_v14  ;;  %v1262_v54 = vpack.c.bf16 %v3069_v52, %v3069_v52  ;;  %1132 = vst.msk [vmem:[#allocation2 + $0x178] sm:$0xff] %vm21_vm3, %v1067_v49  ;;  %v108_v14 = vld [vmem:[#allocation2 + $0xb0] sm:$0xff] }
 0x13a   :  { %v1170_v25 = vld [vmem:[#allocation2 + $0x90] sm:$0xff] }
 0x13b   :  { %v1234_v20 = vpack.c.bf16 %v1170_v25, %v1170_v25  ;;  %v1380_v29 = vsel %vm21_vm3, %v1170_v25, 0.0  ;;  %v1498_v31 = vmul.f32 %v1170_v25, %v1170_v25  ;;  %1104 = vst.msk [vmem:[#allocation2 + $0x98] sm:$0xff] %vm21_vm3, %v1039_v17 }
 0x13c   :  { %v915_v27 = vpop.f32.mrf.mxu1  ;;  %v1381_v34 = vadd.f32 %v1380_v29, %v1379_v11  ;;  %1327 = vst.msk [vmem:[%s3539_s2 + $0xb8] sm:$0xf] %vm1280_vm4, %v1262_v54  ;;  %v980_v63 = vpop.f32.mrf.mxu3 }
 0x13d   :  { %1299 = vst.msk [vmem:[%s3539_s2 + $0x48] sm:$0xf] %vm1280_vm4, %v1234_v20  ;;  %v1579_v26 = vsel %vm21_vm3, %v1498_v31, 0.0  ;;  %v981_v2 = vadd.f32 %v980_v63, %v811_v55  ;;  %v813_v18 = vpop.f32.mrf.mxu2 }
 0x13e   :  { %v1580_v36 = vadd.f32 %v1579_v26, %v1578_v13  ;;  %v741_v37 = vpop.f32.mrf.mxu0 }
 0x13f   :  { %v911_v39 = vadd.f32 %v3003_v48, %v741_v37  ;;  %v1068_v5 = vadd.f32 %v981_v2, %v134_v61  ;;  %v111_v61 = vld [vmem:[#allocation2 + $0xc8] sm:$0xff] }
 0x140   :  { %v3085_v11 = vld [vmem:[#allocation2 + $0x178] sm:$0xff] }
 0x141   :  { %v1040_v43 = vadd.f32 %v911_v39, %v106_v33  ;;  %1133 = vst.msk [vmem:[#allocation2 + $0x180] sm:$0xff] %vm21_vm3, %v1068_v5  ;;  %v136_v33 = vld [vmem:[#allocation2 + $0x190] sm:$0xff] }
 0x142   :  { %v1171_v47 = vld [vmem:[#allocation2 + $0x98] sm:$0xff] }
 0x143   :  { %v1235_v44 = vpack.c.bf16 %v1171_v47, %v1171_v47  ;;  %v1382_v50 = vsel %vm21_vm3, %v1171_v47, 0.0  ;;  %v1499_v46 = vmul.f32 %v1171_v47, %v1171_v47  ;;  %1105 = vst.msk [vmem:[#allocation2 + $0xa0] sm:$0xff] %vm21_vm3, %v1040_v43 }
 0x144   :  { %v917_v51 = vpop.f32.mrf.mxu1  ;;  %v1383_v53 = vadd.f32 %v1382_v50, %v1381_v34  ;;  %v982_v23 = vpop.f32.mrf.mxu3 }
 0x145   :  { %1300 = vst.msk [vmem:[%s3539_s2 + $0x4c] sm:$0xf] %vm1280_vm4, %v1235_v44  ;;  %v1581_v48 = vsel %vm21_vm3, %v1499_v46, 0.0  ;;  %v983_v24 = vadd.f32 %v982_v23, %v813_v18  ;;  %v110_v44 = vld [vmem:[#allocation2 + $0xc0] sm:$0xff] }
 0x146   :  { %v1582_v57 = vadd.f32 %v1581_v48, %v1580_v36  ;;  %v743_v59 = vpop.f32.mrf.mxu0  ;;  %v816_v26 = vpop.f32.mrf.mxu2 }
 0x147   :  { %v913_v60 = vadd.f32 %v912_v9, %v743_v59  ;;  %v1263_v9 = vpack.c.bf16 %v3085_v11, %v3085_v11  ;;  %v1069_v16 = vadd.f32 %v983_v24, %v135_v22  ;;  %v112_v22 = vld [vmem:[#allocation2 + $0xd0] sm:$0xff] }
 0x148   :  { %v3108_v31 = vld [vmem:[#allocation2 + $0x180] sm:$0xff] }
 0x149   :  { %v1041_v56 = vadd.f32 %v913_v60, %v107_v58  ;;  %1328 = vst.msk [vmem:[%s3539_s2 + $0xbc] sm:$0xf] %vm1280_vm4, %v1263_v9  ;;  %v1264_v34 = vpack.c.bf16 %v3108_v31, %v3108_v31 }
 0x14a   :  { %v1172_v3 = vld [vmem:[#allocation2 + $0xa0] sm:$0xff]  ;;  %1134 = vst.msk [vmem:[#allocation2 + $0x188] sm:$0xff] %vm21_vm3, %v1069_v16  ;;  %v139_v16 = vld [vmem:[#allocation2 + $0x1a8] sm:$0xff] }
 0x14b   :  { %v1236_v6 = vpack.c.bf16 %v1172_v3, %v1172_v3  ;;  %v1384_v0 = vsel %vm21_vm3, %v1172_v3, 0.0  ;;  %v1500_v7 = vmul.f32 %v1172_v3, %v1172_v3  ;;  %1106 = vst.msk [vmem:[#allocation2 + $0xa8] sm:$0xff] %vm21_vm3, %v1041_v56  ;;  %v138_v3 = vld [vmem:[#allocation2 + $0x1a0] sm:$0xff] }
 0x14c   :  { %v920_v8 = vpop.f32.mrf.mxu1  ;;  %v3087_v4 = vadd.f32 %v1384_v0, %v1383_v53  ;;  %1329 = vst.msk [vmem:[%s3539_s2 + $0xc0] sm:$0xf] %vm1280_vm4, %v1264_v34  ;;  %v985_v37 = vpop.f32.mrf.mxu3  ;;  %v137_v53 = vld [vmem:[#allocation2 + $0x198] sm:$0xff] }
 0x14d   :  { %1301 = vst.msk [vmem:[%s3539_s2 + $0x50] sm:$0xf] %vm1280_vm4, %v1236_v6  ;;  %v1583_v12 = vsel %vm21_vm3, %v1500_v7, 0.0  ;;  %v986_v38 = vadd.f32 %v985_v37, %v816_v26 }
 0x14e   :  { %v3097_v13 = vadd.f32 %v1583_v12, %v1582_v57  ;;  %v746_v15 = vpop.f32.mrf.mxu0  ;;  %v818_v46 = vpop.f32.mrf.mxu2 }
 0x14f   :  { %v916_v19 = vadd.f32 %v915_v27, %v746_v15  ;;  %v109_v27 = vld [vmem:[#allocation2 + $0xb8] sm:$0xff]  ;;  %v1070_v40 = vadd.f32 %v986_v38, %v136_v33 }
 0x150   :  { %v113_v33 = vld [vmem:[#allocation2 + $0xd8] sm:$0xff] }
 0x151   :  { %v1042_v17 = vadd.f32 %v916_v19, %v108_v14  ;;  %v3126_v47 = vld [vmem:[#allocation2 + $0x188] sm:$0xff]  ;;  %1135 = vst.msk [vmem:[#allocation2 + $0x190] sm:$0xff] %vm21_vm3, %v1070_v40  ;;  %v140_v40 = vld [vmem:[#allocation2 + $0x1b0] sm:$0xff] }
 0x152   :  { %v3103_v25 = vld [vmem:[#allocation2 + $0xa8] sm:$0xff]  ;;  %v1265_v49 = vpack.c.bf16 %v3126_v47, %v3126_v47 }
 0x153   :  { %v1237_v20 = vpack.c.bf16 %v3103_v25, %v3103_v25  ;;  %1107 = vst.msk [vmem:[#allocation2 + $0xb0] sm:$0xff] %vm21_vm3, %v1042_v17 }
 0x154   :  { %v922_v29 = vpop.f32.mrf.mxu1  ;;  %1330 = vst.msk [vmem:[%s3539_s2 + $0xc4] sm:$0xf] %vm1280_vm4, %v1265_v49  ;;  %v987_v54 = vpop.f32.mrf.mxu3 }
 0x155   :  { %1302 = vst.msk [vmem:[%s3539_s2 + $0x54] sm:$0xf] %vm1280_vm4, %v1237_v20  ;;  %v988_v48 = vadd.f32 %v987_v54, %v818_v46 }
 0x156   :  { %v748_v35 = vpop.f32.mrf.mxu0  ;;  %v821_v2 = vpop.f32.mrf.mxu2 }
 0x157   :  { %v918_v36 = vadd.f32 %v917_v51, %v748_v35  ;;  %v1071_v59 = vadd.f32 %v988_v48, %v137_v53 }
 0x158   :  { %v3151_v9 = vld [vmem:[#allocation2 + $0x190] sm:$0xff] }
 0x159   :  { %v1043_v39 = vadd.f32 %v918_v36, %v109_v27  ;;  %1136 = vst.msk [vmem:[#allocation2 + $0x198] sm:$0xff] %vm21_vm3, %v1071_v59  ;;  %v1266_v18 = vpack.c.bf16 %v3151_v9, %v3151_v9  ;;  %v114_v59 = vld [vmem:[#allocation2 + $0xe0] sm:$0xff] }
 0x15a   :  { %v3121_v30 = vld [vmem:[#allocation2 + $0xb0] sm:$0xff] }
 0x15b   :  { %v1238_v42 = vpack.c.bf16 %v3121_v30, %v3121_v30  ;;  %1108 = vst.msk [vmem:[#allocation2 + $0xb8] sm:$0xff] %vm21_vm3, %v1043_v39 }
 0x15c   :  { %v925_v43 = vpop.f32.mrf.mxu1  ;;  %v990_v5 = vpop.f32.mrf.mxu3  ;;  %1331 = vst.msk [vmem:[%s3539_s2 + $0xc8] sm:$0xf] %vm1280_vm4, %v1266_v18 }
 0x15d   :  { %1303 = vst.msk [vmem:[%s3539_s2 + $0x58] sm:$0xf] %vm1280_vm4, %v1238_v42  ;;  %v991_v6 = vadd.f32 %v990_v5, %v821_v2 }
 0x15e   :  { %v751_v50 = vpop.f32.mrf.mxu0  ;;  %v823_v24 = vpop.f32.mrf.mxu2 }
 0x15f   :  { %v921_v51 = vadd.f32 %v920_v8, %v751_v50  ;;  %v1072_v8 = vadd.f32 %v991_v6, %v138_v3 }
 0x160   :  { %v3156_v15 = vld [vmem:[#allocation2 + $0x198] sm:$0xff] }
 0x161   :  { %v1044_v57 = vadd.f32 %v921_v51, %v110_v44  ;;  %1137 = vst.msk [vmem:[#allocation2 + $0x1a0] sm:$0xff] %vm21_vm3, %v1072_v8  ;;  %v1267_v19 = vpack.c.bf16 %v3156_v15, %v3156_v15 }
 0x162   :  { %v3139_v58 = vld [vmem:[#allocation2 + $0xb8] sm:$0xff] }
 0x163   :  { %v1239_v55 = vpack.c.bf16 %v3139_v58, %v3139_v58  ;;  %1109 = vst.msk [vmem:[#allocation2 + $0xc0] sm:$0xff] %vm21_vm3, %v1044_v57 }
 0x164   :  { %v927_v60 = vpop.f32.mrf.mxu1  ;;  %v992_v20 = vpop.f32.mrf.mxu3  ;;  %1332 = vst.msk [vmem:[%s3539_s2 + $0xcc] sm:$0xf] %vm1280_vm4, %v1267_v19 }
 0x165   :  { %1304 = vst.msk [vmem:[%s3539_s2 + $0x5c] sm:$0xf] %vm1280_vm4, %v1239_v55 }
 0x166   :  { %v753_v63 = vpop.f32.mrf.mxu0 }
 0x167   :  { %v923_v56 = vadd.f32 %v922_v29, %v753_v63  ;;  %v993_v29 = vadd.f32 %v992_v20, %v823_v24  ;;  %v141_v63 = vld [vmem:[#allocation2 + $0x1b8] sm:$0xff]  ;;  %v1501_v24 = vmul.f32 %v3103_v25, %v3103_v25 }
 0x168   :  { %v3187_v46 = vld [vmem:[#allocation2 + $0x1a0] sm:$0xff] }
 0x169   :  { %v1045_v0 = vadd.f32 %v923_v56, %v111_v61  ;;  %v1073_v35 = vadd.f32 %v993_v29, %v139_v16  ;;  %v1268_v48 = vpack.c.bf16 %v3187_v46, %v3187_v46  ;;  %v118_v29 = vld [vmem:[#allocation2 + $0x100] sm:$0xff] }
 0x16a   :  { %v3149_v7 = vld [vmem:[#allocation2 + $0xc0] sm:$0xff]  ;;  %v826_v38 = vpop.f32.mrf.mxu2 }
 0x16b   :  { %v1240_v12 = vpack.c.bf16 %v3149_v7, %v3149_v7  ;;  %1110 = vst.msk [vmem:[#allocation2 + $0xc8] sm:$0xff] %vm21_vm3, %v1045_v0 }
 0x16c   :  { %v930_v14 = vpop.f32.mrf.mxu1  ;;  %1138 = vst.msk [vmem:[#allocation2 + $0x1a8] sm:$0xff] %vm21_vm3, %v1073_v35 }
 0x16d   :  { %1305 = vst.msk [vmem:[%s3539_s2 + $0x60] sm:$0xf] %vm1280_vm4, %v1240_v12  ;;  %v115_v12 = vld [vmem:[#allocation2 + $0xe8] sm:$0xff] }
 0x16e   :  { %v756_v23 = vpop.f32.mrf.mxu0  ;;  %1333 = vst.msk [vmem:[%s3539_s2 + $0xd0] sm:$0xf] %vm1280_vm4, %v1268_v48 }
 0x16f   :  { %v926_v17 = vadd.f32 %v925_v43, %v756_v23 }
 0x171   :  { %v1046_v34 = vadd.f32 %v926_v17, %v112_v22 }
 0x172   :  { %v3175_v27 = vld [vmem:[#allocation2 + $0xc8] sm:$0xff] }
 0x173   :  { %v1241_v26 = vpack.c.bf16 %v3175_v27, %v3175_v27  ;;  %1111 = vst.msk [vmem:[#allocation2 + $0xd0] sm:$0xff] %vm21_vm3, %v1046_v34  ;;  %v3192_v54 = vld [vmem:[#allocation2 + $0x1a8] sm:$0xff] }
 0x174   :  { %v932_v36 = vpop.f32.mrf.mxu1  ;;  %v1269_v57 = vpack.c.bf16 %v3192_v54, %v3192_v54 }
 0x175   :  { %1306 = vst.msk [vmem:[%s3539_s2 + $0x64] sm:$0xf] %vm1280_vm4, %v1241_v26  ;;  %v995_v42 = vpop.f32.mrf.mxu3 }
 0x176   :  { %v758_v37 = vpop.f32.mrf.mxu0  ;;  %v996_v43 = vadd.f32 %v995_v42, %v826_v38  ;;  %1334 = vst.msk [vmem:[%s3539_s2 + $0xd4] sm:$0xf] %vm1280_vm4, %v1269_v57  ;;  %v1386_v38 = vsel %vm21_vm3, %v3103_v25, 0.0  ;;  %v116_v42 = vld [vmem:[#allocation2 + $0xf0] sm:$0xff]  ;;  %v1503_v25 = vmul.f32 %v3139_v58, %v3139_v58 }
 0x177   :  { %v928_v39 = vadd.f32 %v927_v60, %v758_v37  ;;  %v828_v60 = vpop.f32.mrf.mxu2  ;;  %v1387_v57 = vadd.f32 %v1386_v38, %v3087_v4 }
 0x178   :  { %v1074_v50 = vadd.f32 %v996_v43, %v140_v40 }
 0x179   :  { %v1047_v49 = vadd.f32 %v928_v39, %v113_v33  ;;  %v1585_v39 = vsel %vm21_vm3, %v1501_v24, 0.0 }
 0x17a   :  { %v3185_v44 = vld [vmem:[#allocation2 + $0xd0] sm:$0xff]  ;;  %1139 = vst.msk [vmem:[#allocation2 + $0x1b0] sm:$0xff] %vm21_vm3, %v1074_v50 }
 0x17b   :  { %v1242_v51 = vpack.c.bf16 %v3185_v44, %v3185_v44  ;;  %1112 = vst.msk [vmem:[#allocation2 + $0xd8] sm:$0xff] %vm21_vm3, %v1047_v49 }
 0x17c   :  { %v935_v53 = vpop.f32.mrf.mxu1 }
 0x17d   :  { %1307 = vst.msk [vmem:[%s3539_s2 + $0x68] sm:$0xf] %vm1280_vm4, %v1242_v51  ;;  %v997_v2 = vpop.f32.mrf.mxu3 }
 0x17e   :  { %v761_v55 = vpop.f32.mrf.mxu0  ;;  %v998_v56 = vadd.f32 %v997_v2, %v828_v60  ;;  %v143_v60 = vld [vmem:[#allocation2 + $0x1c8] sm:$0xff] }
 0x17f   :  { %v931_v61 = vadd.f32 %v930_v14, %v761_v55  ;;  %v831_v18 = vpop.f32.mrf.mxu2  ;;  %v142_v55 = vld [vmem:[#allocation2 + $0x1c0] sm:$0xff] }
 0x180   :  { %v1075_v6 = vadd.f32 %v998_v56, %v141_v63  ;;  %v1586_v56 = vadd.f32 %v1585_v39, %v3097_v13 }
 0x181   :  { %v1048_v3 = vadd.f32 %v931_v61, %v114_v59  ;;  %v3227_v16 = vld [vmem:[#allocation2 + $0x1b0] sm:$0xff]  ;;  %v1390_v61 = vsel %vm21_vm3, %v3139_v58, 0.0  ;;  %v119_v58 = vld [vmem:[#allocation2 + $0x108] sm:$0xff] }
 0x182   :  { %v3211_v5 = vld [vmem:[#allocation2 + $0xd8] sm:$0xff]  ;;  %1140 = vst.msk [vmem:[#allocation2 + $0x1b8] sm:$0xff] %vm21_vm3, %v1075_v6  ;;  %v1270_v26 = vpack.c.bf16 %v3227_v16, %v3227_v16 }
 0x183   :  { %v1243_v0 = vpack.c.bf16 %v3211_v5, %v3211_v5  ;;  %1113 = vst.msk [vmem:[#allocation2 + $0xe0] sm:$0xff] %vm21_vm3, %v1048_v3  ;;  %v1507_v38 = vmul.f32 %v3211_v5, %v3211_v5 }
 0x184   :  { %v3216_v8 = vpop.f32.mrf.mxu1  ;;  %1335 = vst.msk [vmem:[%s3539_s2 + $0xd8] sm:$0xf] %vm1280_vm4, %v1270_v26 }
 0x185   :  { %1308 = vst.msk [vmem:[%s3539_s2 + $0x6c] sm:$0xf] %vm1280_vm4, %v1243_v0  ;;  %v1000_v22 = vpop.f32.mrf.mxu3  ;;  %v1589_v0 = vsel %vm21_vm3, %v1503_v25, 0.0 }
 0x186   :  { %v763_v14 = vpop.f32.mrf.mxu0  ;;  %v1001_v51 = vadd.f32 %v1000_v22, %v831_v18 }
 0x187   :  { %v933_v19 = vadd.f32 %v932_v36, %v763_v14  ;;  %v1502_v36 = vmul.f32 %v3121_v30, %v3121_v30  ;;  %v833_v49 = vpop.f32.mrf.mxu2  ;;  %v1505_v14 = vmul.f32 %v3175_v27, %v3175_v27 }
 0x188   :  { %v1076_v2 = vadd.f32 %v1001_v51, %v142_v55 }
 0x189   :  { %v1049_v23 = vadd.f32 %v933_v19, %v115_v12  ;;  %v3232_v35 = vld [vmem:[#allocation2 + $0x1b8] sm:$0xff]  ;;  %v1587_v59 = vsel %vm21_vm3, %v1502_v36, 0.0  ;;  %v1392_v12 = vsel %vm21_vm3, %v3149_v7, 0.0 }
 0x18a   :  { %v3225_v17 = vld [vmem:[#allocation2 + $0xe0] sm:$0xff]  ;;  %v1271_v37 = vpack.c.bf16 %v3232_v35, %v3232_v35  ;;  %v1588_v22 = vadd.f32 %v1587_v59, %v1586_v56  ;;  %1141 = vst.msk [vmem:[#allocation2 + $0x1c0] sm:$0xff] %vm21_vm3, %v1076_v2  ;;  %v117_v36 = vld [vmem:[#allocation2 + $0xf8] sm:$0xff] }
 0x18b   :  { %v1244_v20 = vpack.c.bf16 %v3225_v17, %v3225_v17  ;;  %1114 = vst.msk [vmem:[#allocation2 + $0xe8] sm:$0xff] %vm21_vm3, %v1049_v23 }
 0x18c   :  { %v940_v34 = vpop.f32.mrf.mxu1  ;;  %1336 = vst.msk [vmem:[%s3539_s2 + $0xdc] sm:$0xf] %vm1280_vm4, %v1271_v37  ;;  %v1593_v37 = vsel %vm21_vm3, %v1505_v14, 0.0 }
 0x18d   :  { %v941_v33 = vadd.f32 %v940_v34, %v2676_v62  ;;  %1309 = vst.msk [vmem:[%s3539_s2 + $0x70] sm:$0xf] %vm1280_vm4, %v1244_v20  ;;  %v1388_v62 = vsel %vm21_vm3, %v3121_v30, 0.0  ;;  %v1002_v48 = vpop.f32.mrf.mxu3  ;;  %v1394_v20 = vsel %vm21_vm3, %v3175_v27, 0.0  ;;  %v1396_v27 = vsel %vm21_vm3, %v3185_v44, 0.0 }
 0x18e   :  { %v766_v43 = vpop.f32.mrf.mxu0  ;;  %v1003_v30 = vadd.f32 %v1002_v48, %v833_v49  ;;  %v1389_v3 = vadd.f32 %v1388_v62, %v1387_v57  ;;  %v1398_v48 = vsel %vm21_vm3, %v3211_v5, 0.0 }
 0x18f   :  { %v1052_v40 = vadd.f32 %v941_v33, %v118_v29  ;;  %v936_v50 = vadd.f32 %v935_v53, %v766_v43  ;;  %v1504_v53 = vmul.f32 %v3149_v7, %v3149_v7  ;;  %v1506_v7 = vmul.f32 %v3185_v44, %v3185_v44  ;;  %v836_v33 = vpop.f32.mrf.mxu2 }
 0x190   :  { %v1077_v4 = vadd.f32 %v1003_v30, %v143_v60  ;;  %v1391_v23 = vadd.f32 %v1390_v61, %v1389_v3  ;;  %v1590_v29 = vadd.f32 %v1589_v0, %v1588_v22  ;;  %v1508_v44 = vmul.f32 %v3225_v17, %v3225_v17 }
 0x191   :  { %1117 = vst.msk [vmem:[#allocation2 + $0x100] sm:$0xff] %vm21_vm3, %v1052_v40  ;;  %v1050_v63 = vadd.f32 %v936_v50, %v116_v42  ;;  %v1591_v24 = vsel %vm21_vm3, %v1504_v53, 0.0  ;;  %v144_v42 = vld [vmem:[#allocation2 + $0x1d0] sm:$0xff]  ;;  %v1595_v51 = vsel %vm21_vm3, %v1506_v7, 0.0  ;;  %v1597_v30 = vsel %vm21_vm3, %v1507_v38, 0.0 }
 0x192   :  { %v1181_v6 = vld [vmem:[#allocation2 + $0xe8] sm:$0xff]  ;;  %v1393_v34 = vadd.f32 %v1392_v12, %v1391_v23  ;;  %1142 = vst.msk [vmem:[#allocation2 + $0x1c8] sm:$0xff] %vm21_vm3, %v1077_v4  ;;  %v1592_v49 = vadd.f32 %v1591_v24, %v1590_v29  ;;  %v1400_v61 = vsel %vm21_vm3, %v3225_v17, 0.0  ;;  %v1599_v4 = vsel %vm21_vm3, %v1508_v44, 0.0 }
 0x193   :  { %v1245_v18 = vpack.c.bf16 %v1181_v6, %v1181_v6  ;;  %1115 = vst.msk [vmem:[#allocation2 + $0xf0] sm:$0xff] %vm21_vm3, %v1050_v63  ;;  %v1509_v53 = vmul.f32 %v1181_v6, %v1181_v6  ;;  %v3306_v63 = vld [vmem:[#allocation2 + $0x1c0] sm:$0xff]  ;;  %v1402_v0 = vsel %vm21_vm3, %v1181_v6, 0.0 }
 0x194   :  { %v942_v19 = vpop.f32.mrf.mxu1  ;;  %v1395_v62 = vadd.f32 %v1394_v20, %v1393_v34  ;;  %v1594_v59 = vadd.f32 %v1593_v37, %v1592_v49  ;;  %v1272_v3 = vpack.c.bf16 %v3306_v63, %v3306_v63 }
 0x195   :  { %v943_v13 = vadd.f32 %v942_v19, %v2701_v21  ;;  %1310 = vst.msk [vmem:[%s3539_s2 + $0x74] sm:$0xf] %vm1280_vm4, %v1245_v18  ;;  %v1005_v43 = vpop.f32.mrf.mxu3  ;;  %v1601_v6 = vsel %vm21_vm3, %v1509_v53, 0.0 }
 0x196   :  { %v768_v21 = vpop.f32.mrf.mxu0  ;;  %v1006_v50 = vadd.f32 %v1005_v43, %v836_v33  ;;  %v1397_v55 = vadd.f32 %v1396_v27, %v1395_v62  ;;  %v1596_v2 = vadd.f32 %v1595_v51, %v1594_v59  ;;  %1337 = vst.msk [vmem:[%s3539_s2 + $0xe0] sm:$0xf] %vm1280_vm4, %v1272_v3 }
 0x197   :  { %v1053_v26 = vadd.f32 %v943_v13, %v119_v58  ;;  %v938_v40 = vadd.f32 %v3216_v8, %v768_v21  ;;  %v838_v58 = vpop.f32.mrf.mxu2  ;;  %v145_v13 = vld [vmem:[#allocation2 + $0x1d8] sm:$0xff] }
 0x198   :  { %v1184_v39 = vld [vmem:[#allocation2 + $0x100] sm:$0xff]  ;;  %v1078_v60 = vadd.f32 %v1006_v50, %v144_v42  ;;  %v1399_v56 = vadd.f32 %v1398_v48, %v1397_v55  ;;  %v1598_v14 = vadd.f32 %v1597_v30, %v1596_v2 }
 0x199   :  { %v1248_v25 = vpack.c.bf16 %v1184_v39, %v1184_v39  ;;  %1118 = vst.msk [vmem:[#allocation2 + $0x108] sm:$0xff] %vm21_vm3, %v1053_v26  ;;  %v1051_v57 = vadd.f32 %v938_v40, %v117_v36  ;;  %v3317_v12 = vld [vmem:[#allocation2 + $0x1c8] sm:$0xff]  ;;  %v1512_v27 = vmul.f32 %v1184_v39, %v1184_v39  ;;  %v1408_v62 = vsel %vm21_vm3, %v1184_v39, 0.0 }
 0x19a   :  { %v1182_v8 = vld [vmem:[#allocation2 + $0xf0] sm:$0xff]  ;;  %1143 = vst.msk [vmem:[#allocation2 + $0x1d0] sm:$0xff] %vm21_vm3, %v1078_v60  ;;  %v1401_v18 = vadd.f32 %v1400_v61, %v1399_v56  ;;  %v1273_v19 = vpack.c.bf16 %v3317_v12, %v3317_v12  ;;  %v1600_v20 = vadd.f32 %v1599_v4, %v1598_v14  ;;  %v146_v60 = vld [vmem:[#allocation2 + $0x1e0] sm:$0xff]  ;;  %v2126_v56 = vld [vmem:[#allocation2 + $0x118] sm:$0xff] }
 0x19b   :  { %1313 = vst.msk [vmem:[%s3539_s2 + $0x80] sm:$0xf] %vm1280_vm4, %v1248_v25  ;;  %v1246_v5 = vpack.c.bf16 %v1182_v8, %v1182_v8  ;;  %v1510_v17 = vmul.f32 %v1182_v8, %v1182_v8  ;;  %v1404_v22 = vsel %vm21_vm3, %v1182_v8, 0.0  ;;  %v1607_v55 = vsel %vm21_vm3, %v1512_v27, 0.0 }
 0x19c   :  { %1116 = vst.msk [vmem:[#allocation2 + $0xf8] sm:$0xff] %vm21_vm3, %v1051_v57  ;;  %v1403_v7 = vadd.f32 %v1402_v0, %v1401_v18  ;;  %v1602_v36 = vadd.f32 %v1601_v6, %v1600_v20  ;;  %v2125_v57 = vld [vmem:[#allocation2 + $0x110] sm:$0xff]  ;;  %v1515_v3 = vmul.f32 %v2126_v56, %v2126_v56 }
 0x19d   :  { %1311 = vst.msk [vmem:[%s3539_s2 + $0x78] sm:$0xf] %vm1280_vm4, %v1246_v5  ;;  %v1007_v24 = vpop.f32.mrf.mxu3  ;;  %v1603_v26 = vsel %vm21_vm3, %v1510_v17, 0.0  ;;  %v1514_v59 = vmul.f32 %v2125_v57, %v2125_v57  ;;  %v1412_v2 = vsel %vm21_vm3, %v2125_v57, 0.0 }
 0x19e   :  { %v1008_v34 = vadd.f32 %v1007_v24, %v838_v58  ;;  %1338 = vst.msk [vmem:[%s3539_s2 + $0xe4] sm:$0xf] %vm1280_vm4, %v1273_v19  ;;  %v1405_v21 = vadd.f32 %v1404_v22, %v1403_v7  ;;  %v1604_v43 = vadd.f32 %v1603_v26, %v1602_v36  ;;  %v1414_v58 = vsel %vm21_vm3, %v2126_v56, 0.0  ;;  %v2127_v19 = vld [vmem:[#allocation2 + $0x120] sm:$0xff] }
 0x19f   :  { %v841_v44 = vpop.f32.mrf.mxu2  ;;  %v1611_v18 = vsel %vm21_vm3, %v1514_v59, 0.0  ;;  %v1516_v6 = vmul.f32 %v2127_v19, %v2127_v19  ;;  %v1613_v7 = vsel %vm21_vm3, %v1515_v3, 0.0  ;;  %v1424_v3 = vsel %vm21_vm3, %v2934_v45, 0.0 }
 0x1a0   :  { %v1185_v23 = vld [vmem:[#allocation2 + $0x108] sm:$0xff]  ;;  %v1079_v37 = vadd.f32 %v1008_v34, %v145_v13 }
 0x1a1   :  { %v1249_v29 = vpack.c.bf16 %v1185_v23, %v1185_v23  ;;  %v1513_v25 = vmul.f32 %v1185_v23, %v1185_v23  ;;  %v1410_v8 = vsel %vm21_vm3, %v1185_v23, 0.0  ;;  %v3346_v5 = vld [vmem:[#allocation2 + $0x1d0] sm:$0xff]  ;;  %v2128_v34 = vld [vmem:[#allocation2 + $0x128] sm:$0xff] }
 0x1a2   :  { %1144 = vst.msk [vmem:[#allocation2 + $0x1d8] sm:$0xff] %vm21_vm3, %v1079_v37  ;;  %v1274_v23 = vpack.c.bf16 %v3346_v5, %v3346_v5  ;;  %v1517_v26 = vmul.f32 %v2128_v34, %v2128_v34  ;;  %v1615_v37 = vsel %vm21_vm3, %v1516_v6, 0.0  ;;  %v1418_v27 = vsel %vm21_vm3, %v2128_v34, 0.0 }
 0x1a3   :  { %1314 = vst.msk [vmem:[%s3539_s2 + $0x84] sm:$0xf] %vm1280_vm4, %v1249_v29  ;;  %v1183_v33 = vld [vmem:[#allocation2 + $0xf8] sm:$0xff]  ;;  %v1609_v4 = vsel %vm21_vm3, %v1513_v25, 0.0  ;;  %v1416_v29 = vsel %vm21_vm3, %v2127_v19, 0.0  ;;  %v148_v19 = vld [vmem:[#allocation2 + $0x1f0] sm:$0xff] }
 0x1a4   :  { %v1247_v38 = vpack.c.bf16 %v1183_v33, %v1183_v33  ;;  %v1406_v40 = vsel %vm21_vm3, %v1183_v33, 0.0  ;;  %v1511_v42 = vmul.f32 %v1183_v33, %v1183_v33  ;;  %1339 = vst.msk [vmem:[%s3539_s2 + $0xe8] sm:$0xf] %vm1280_vm4, %v1274_v23 }
 0x1a5   :  { %v1407_v49 = vadd.f32 %v1406_v40, %v1405_v21  ;;  %v1010_v30 = vpop.f32.mrf.mxu3 }
 0x1a6   :  { %1312 = vst.msk [vmem:[%s3539_s2 + $0x7c] sm:$0xf] %vm1280_vm4, %v1247_v38  ;;  %v1605_v50 = vsel %vm21_vm3, %v1511_v42, 0.0  ;;  %v1011_v53 = vadd.f32 %v1010_v30, %v841_v44  ;;  %v2129_v38 = vld [vmem:[#allocation2 + $0x130] sm:$0xff]  ;;  %v147_v42 = vld [vmem:[#allocation2 + $0x1e8] sm:$0xff]  ;;  %v1520_v30 = vmul.f32 %v2934_v45, %v2934_v45  ;;  %v1522_v45 = vmul.f32 %v2985_v28, %v2985_v28 }
 0x1a7   :  { %v1409_v51 = vadd.f32 %v1408_v62, %v1407_v49  ;;  %v1606_v48 = vadd.f32 %v1605_v50, %v1604_v43  ;;  %v843_v33 = vpop.f32.mrf.mxu2  ;;  %v1518_v40 = vmul.f32 %v2129_v38, %v2129_v38  ;;  %v1617_v50 = vsel %vm21_vm3, %v1517_v26, 0.0 }
 0x1a8   :  { %v1080_v14 = vadd.f32 %v1011_v53, %v146_v60 }
 0x1a9   :  { %v1411_v39 = vadd.f32 %v1410_v8, %v1409_v51  ;;  %v1608_v61 = vadd.f32 %v1607_v55, %v1606_v48  ;;  %v3352_v22 = vld [vmem:[#allocation2 + $0x1d8] sm:$0xff]  ;;  %v1420_v51 = vsel %vm21_vm3, %v2129_v38, 0.0  ;;  %v1619_v8 = vsel %vm21_vm3, %v1518_v40, 0.0 }
 0x1aa   :  { %1145 = vst.msk [vmem:[#allocation2 + $0x1e0] sm:$0xff] %vm21_vm3, %v1080_v14  ;;  %v1275_v20 = vpack.c.bf16 %v3352_v22, %v3352_v22  ;;  %v2130_v48 = vld [vmem:[#allocation2 + $0x138] sm:$0xff]  ;;  %v1432_v38 = vsel %vm21_vm3, %v3034_v10, 0.0 }
 0x1ab   :  { %v1413_v0 = vadd.f32 %v1412_v2, %v1411_v39  ;;  %v1610_v17 = vadd.f32 %v1609_v4, %v1608_v61  ;;  %v1519_v44 = vmul.f32 %v2130_v48, %v2130_v48  ;;  %v1422_v60 = vsel %vm21_vm3, %v2130_v48, 0.0 }
 0x1ac   :  { %1340 = vst.msk [vmem:[%s3539_s2 + $0xec] sm:$0xf] %vm1280_vm4, %v1275_v20  ;;  %v1521_v4 = vmul.f32 %v2954_v1, %v2954_v1  ;;  %v1526_v48 = vmul.f32 %v3069_v52, %v3069_v52 }
 0x1ad   :  { %v1415_v13 = vadd.f32 %v1414_v58, %v1413_v0  ;;  %v1612_v24 = vadd.f32 %v1611_v18, %v1610_v17  ;;  %v1012_v43 = vpop.f32.mrf.mxu3  ;;  %v1621_v56 = vsel %vm21_vm3, %v1519_v44, 0.0  ;;  %v1623_v18 = vsel %vm21_vm3, %v1520_v30, 0.0 }
 0x1ae   :  { %v1013_v25 = vadd.f32 %v1012_v43, %v843_v33  ;;  %v1426_v58 = vsel %vm21_vm3, %v2954_v1, 0.0  ;;  %v1625_v20 = vsel %vm21_vm3, %v1521_v4, 0.0  ;;  %v1430_v1 = vsel %vm21_vm3, %v3005_v41, 0.0 }
 0x1af   :  { %v1417_v36 = vadd.f32 %v1416_v29, %v1415_v13  ;;  %v1614_v21 = vadd.f32 %v1613_v7, %v1612_v24  ;;  %v846_v0 = vpop.f32.mrf.mxu2  ;;  %v1428_v7 = vsel %vm21_vm3, %v2985_v28, 0.0  ;;  %v1523_v29 = vmul.f32 %v3005_v41, %v3005_v41 }
 0x1b0   :  { %v1081_v55 = vadd.f32 %v1013_v25, %v147_v42  ;;  %v1627_v33 = vsel %vm21_vm3, %v1522_v45, 0.0  ;;  %v1525_v41 = vmul.f32 %v3052_v32, %v3052_v32  ;;  %v149_v25 = vld [vmem:[#allocation2 + $0x1f8] sm:$0xff] }
 0x1b1   :  { %v1419_v49 = vadd.f32 %v1418_v27, %v1417_v36  ;;  %v1616_v62 = vadd.f32 %v1615_v37, %v1614_v21  ;;  %v3377_v39 = vld [vmem:[#allocation2 + $0x1e0] sm:$0xff]  ;;  %v1524_v37 = vmul.f32 %v3034_v10, %v3034_v10  ;;  %v1629_v42 = vsel %vm21_vm3, %v1523_v29, 0.0 }
 0x1b2   :  { %1146 = vst.msk [vmem:[#allocation2 + $0x1e8] sm:$0xff] %vm21_vm3, %v1081_v55  ;;  %v1276_v53 = vpack.c.bf16 %v3377_v39, %v3377_v39 }
 0x1b3   :  { %v1421_v57 = vadd.f32 %v1420_v51, %v1419_v49  ;;  %v1618_v59 = vadd.f32 %v1617_v50, %v1616_v62  ;;  %v1434_v62 = vsel %vm21_vm3, %v3052_v32, 0.0  ;;  %v1631_v10 = vsel %vm21_vm3, %v1524_v37, 0.0 }
 0x1b4   :  { %1341 = vst.msk [vmem:[%s3539_s2 + $0xf0] sm:$0xf] %vm1280_vm4, %v1276_v53 }
 0x1b5   :  { %v1620_v61 = vadd.f32 %v1619_v8, %v1618_v59  ;;  %v1423_v2 = vadd.f32 %v1422_v60, %v1421_v57  ;;  %v1015_v6 = vpop.f32.mrf.mxu3  ;;  %v1436_v59 = vsel %vm21_vm3, %v3069_v52, 0.0  ;;  %v1633_v8 = vsel %vm21_vm3, %v1525_v41, 0.0 }
 0x1b6   :  { %v1016_v23 = vadd.f32 %v1015_v6, %v846_v0  ;;  %v1527_v60 = vmul.f32 %v3085_v11, %v3085_v11  ;;  %v1440_v0 = vsel %vm21_vm3, %v3108_v31, 0.0 }
 0x1b7   :  { %v1425_v17 = vadd.f32 %v1424_v3, %v1423_v2  ;;  %v1622_v14 = vadd.f32 %v1621_v56, %v1620_v61  ;;  %v848_v43 = vpop.f32.mrf.mxu2  ;;  %v1438_v61 = vsel %vm21_vm3, %v3085_v11, 0.0  ;;  %v1635_v56 = vsel %vm21_vm3, %v1526_v48, 0.0 }
 0x1b8   :  { %v1082_v34 = vadd.f32 %v1016_v23, %v148_v19  ;;  %v1528_v3 = vmul.f32 %v3108_v31, %v3108_v31  ;;  %v1637_v11 = vsel %vm21_vm3, %v1527_v60, 0.0  ;;  %v1530_v31 = vmul.f32 %v3151_v9, %v3151_v9 }
 0x1b9   :  { %v1427_v13 = vadd.f32 %v1426_v58, %v1425_v17  ;;  %v1624_v24 = vadd.f32 %v1623_v18, %v1622_v14  ;;  %v3403_v21 = vld [vmem:[#allocation2 + $0x1e8] sm:$0xff]  ;;  %v1529_v14 = vmul.f32 %v3126_v47, %v3126_v47  ;;  %v1442_v58 = vsel %vm21_vm3, %v3126_v47, 0.0 }
 0x1ba   :  { %1147 = vst.msk [vmem:[#allocation2 + $0x1f0] sm:$0xff] %vm21_vm3, %v1082_v34  ;;  %v1277_v28 = vpack.c.bf16 %v3403_v21, %v3403_v21  ;;  %v1639_v45 = vsel %vm21_vm3, %v1528_v3, 0.0  ;;  %v1444_v23 = vsel %vm21_vm3, %v3151_v9, 0.0  ;;  %v1446_v47 = vsel %vm21_vm3, %v3156_v15, 0.0 }
 0x1bb   :  { %v1429_v26 = vadd.f32 %v1428_v7, %v1427_v13  ;;  %v1626_v36 = vadd.f32 %v1625_v20, %v1624_v24  ;;  %v1531_v20 = vmul.f32 %v3156_v15, %v3156_v15  ;;  %v1641_v7 = vsel %vm21_vm3, %v1529_v14, 0.0 }
 0x1bc   :  { %1342 = vst.msk [vmem:[%s3539_s2 + $0xf4] sm:$0xf] %vm1280_vm4, %v1277_v28  ;;  %v1532_v9 = vmul.f32 %v3187_v46, %v3187_v46  ;;  %v1533_v28 = vmul.f32 %v3192_v54, %v3192_v54  ;;  %v1536_v48 = vmul.f32 %v3306_v63, %v3306_v63  ;;  %v1539_v3 = vmul.f32 %v3352_v22, %v3352_v22 }
 0x1bd   :  { %v1431_v27 = vadd.f32 %v1430_v1, %v1429_v26  ;;  %v1628_v40 = vadd.f32 %v1627_v33, %v1626_v36  ;;  %v1017_v50 = vpop.f32.mrf.mxu3  ;;  %v1643_v1 = vsel %vm21_vm3, %v1530_v31, 0.0  ;;  %v1448_v33 = vsel %vm21_vm3, %v3187_v46, 0.0 }
 0x1be   :  { %v1018_v44 = vadd.f32 %v1017_v50, %v848_v43  ;;  %v1534_v46 = vmul.f32 %v3227_v16, %v3227_v16  ;;  %v1647_v41 = vsel %vm21_vm3, %v1532_v9, 0.0  ;;  %v1452_v43 = vsel %vm21_vm3, %v3227_v16, 0.0 }
 0x1bf   :  { %v1433_v49 = vadd.f32 %v1432_v38, %v1431_v27  ;;  %v1630_v51 = vadd.f32 %v1629_v42, %v1628_v40  ;;  %v1645_v27 = vsel %vm21_vm3, %v1531_v20, 0.0  ;;  %v1450_v38 = vsel %vm21_vm3, %v3192_v54, 0.0 }
 0x1c0   :  { %v1083_v32 = vadd.f32 %v1018_v44, %v149_v25  ;;  %v1535_v25 = vmul.f32 %v3232_v35, %v3232_v35  ;;  %v1649_v50 = vsel %vm21_vm3, %v1533_v28, 0.0  ;;  %v1454_v54 = vsel %vm21_vm3, %v3232_v35, 0.0 }
 0x1c1   :  { %v1435_v57 = vadd.f32 %v1434_v62, %v1433_v49  ;;  %v1632_v55 = vadd.f32 %v1631_v10, %v1630_v51  ;;  %v3432_v53 = vld [vmem:[#allocation2 + $0x1f0] sm:$0xff]  ;;  %v1651_v44 = vsel %vm21_vm3, %v1534_v46, 0.0  ;;  %v1456_v16 = vsel %vm21_vm3, %v3306_v63, 0.0 }
 0x1c2   :  { %1148 = vst.msk [vmem:[#allocation2 + $0x1f8] sm:$0xff] %vm21_vm3, %v1083_v32  ;;  %v1278_v52 = vpack.c.bf16 %v3432_v53, %v3432_v53  ;;  %v1458_v35 = vsel %vm21_vm3, %v3317_v12, 0.0  ;;  %v1460_v63 = vsel %vm21_vm3, %v3346_v5, 0.0 }
 0x1c3   :  { %v1437_v30 = vadd.f32 %v1436_v59, %v1435_v57  ;;  %v1634_v2 = vadd.f32 %v1633_v8, %v1632_v55  ;;  %v1537_v55 = vmul.f32 %v3317_v12, %v3317_v12  ;;  %v1653_v8 = vsel %vm21_vm3, %v1535_v25, 0.0 }
 0x1c4   :  { %1343 = vst.msk [vmem:[%s3539_s2 + $0xf8] sm:$0xf] %vm1280_vm4, %v1278_v52  ;;  %v1462_v12 = vsel %vm21_vm3, %v3352_v22, 0.0  ;;  %v1466_v22 = vsel %vm21_vm3, %v3403_v21, 0.0 }
 0x1c5   :  { %v1439_v4 = vadd.f32 %v1438_v61, %v1437_v30  ;;  %v1636_v17 = vadd.f32 %v1635_v56, %v1634_v2  ;;  %v1538_v30 = vmul.f32 %v3346_v5, %v3346_v5  ;;  %v1655_v61 = vsel %vm21_vm3, %v1536_v48, 0.0 }
 0x1c6   :  { %v1657_v52 = vsel %vm21_vm3, %v1537_v55, 0.0  ;;  %v1464_v5 = vsel %vm21_vm3, %v3377_v39, 0.0 }
 0x1c7   :  { %v1441_v18 = vadd.f32 %v1440_v0, %v1439_v4  ;;  %v1638_v19 = vadd.f32 %v1637_v11, %v1636_v17  ;;  %v1540_v17 = vmul.f32 %v3377_v39, %v3377_v39  ;;  %v1659_v11 = vsel %vm21_vm3, %v1538_v30, 0.0 }
 0x1c8   :  { %v1468_v39 = vsel %vm21_vm3, %v3432_v53, 0.0 }
 0x1c9   :  { %v1443_v6 = vadd.f32 %v1442_v58, %v1441_v18  ;;  %v1640_v13 = vadd.f32 %v1639_v45, %v1638_v19  ;;  %v3459_v29 = vld [vmem:[#allocation2 + $0x1f8] sm:$0xff]  ;;  %v1541_v58 = vmul.f32 %v3403_v21, %v3403_v21  ;;  %v1661_v19 = vsel %vm21_vm3, %v1539_v3, 0.0 }
 0x1ca   :  { %v1279_v26 = vpack.c.bf16 %v3459_v29, %v3459_v29  ;;  %v1542_v45 = vmul.f32 %v3432_v53, %v3432_v53  ;;  %v1543_v20 = vmul.f32 %v3459_v29, %v3459_v29  ;;  %v1470_v21 = vsel %vm21_vm3, %v3459_v29, 0.0 }
 0x1cb   :  { %v1445_v24 = vadd.f32 %v1444_v23, %v1443_v6  ;;  %v1642_v34 = vadd.f32 %v1641_v7, %v1640_v13  ;;  %v1663_v23 = vsel %vm21_vm3, %v1540_v17, 0.0  ;;  %v1665_v7 = vsel %vm21_vm3, %v1541_v58, 0.0 }
 0x1cc   :  { %1344 = vst.msk [vmem:[%s3539_s2 + $0xfc] sm:$0xf] %vm1280_vm4, %v1279_v26  ;;  %v1667_v26 = vsel %vm21_vm3, %v1542_v45, 0.0  ;;  %s2185_s2 = smov [#allocation3]  }
 0x1cd   :  { %v1447_v36 = vadd.f32 %v1446_v47, %v1445_v24  ;;  %v1644_v37 = vadd.f32 %v1643_v1, %v1642_v34  ;;  %v1669_v1 = vsel %vm21_vm3, %v1543_v20, 0.0  ;;  %s1685_s12 = sshll.u32 %s2185_s2, 4  ;;  %s1686_s12 = int_to_ptr.vmem [resolvable:$true] %s1685_s12 }
 0x1cf   :  { %v1449_v15 = vadd.f32 %v1448_v33, %v1447_v36  ;;  %v1646_v40 = vadd.f32 %v1645_v27, %v1644_v37 }
 0x1d1   :  { %v1451_v42 = vadd.f32 %v1450_v38, %v1449_v15  ;;  %v1648_v49 = vadd.f32 %v1647_v41, %v1646_v40 }
 0x1d3   :  { %v1453_v62 = vadd.f32 %v1452_v43, %v1451_v42  ;;  %v1650_v51 = vadd.f32 %v1649_v50, %v1648_v49 }
 0x1d5   :  { %v1455_v10 = vadd.f32 %v1454_v54, %v1453_v62  ;;  %v1652_v57 = vadd.f32 %v1651_v44, %v1650_v51 }
 0x1d7   :  { %v1457_v59 = vadd.f32 %v1456_v16, %v1455_v10  ;;  %v1654_v60 = vadd.f32 %v1653_v8, %v1652_v57 }
 0x1d9   :  { %v1459_v32 = vadd.f32 %v1458_v35, %v1457_v59  ;;  %v1656_v2 = vadd.f32 %v1655_v61, %v1654_v60 }
 0x1db   :  { %v1461_v56 = vadd.f32 %v1460_v63, %v1459_v32  ;;  %v1658_v4 = vadd.f32 %v1657_v52, %v1656_v2 }
 0x1dd   :  { %v1463_v0 = vadd.f32 %v1462_v12, %v1461_v56  ;;  %v1660_v14 = vadd.f32 %v1659_v11, %v1658_v4 }
 0x1df   :  { %v1465_v18 = vadd.f32 %v1464_v5, %v1463_v0  ;;  %v1662_v6 = vadd.f32 %v1661_v19, %v1660_v14 }
 0x1e1   :  { %v1467_v31 = vadd.f32 %v1466_v22, %v1465_v18  ;;  %v1664_v13 = vadd.f32 %v1663_v23, %v1662_v6 }
 0x1e3   :  { %v1469_v24 = vadd.f32 %v1468_v39, %v1467_v31  ;;  %v1666_v47 = vadd.f32 %v1665_v7, %v1664_v13 }
 0x1e5   :  { %v1471_v34 = vadd.f32 %v1470_v21, %v1469_v24  ;;  %v1668_v36 = vadd.f32 %v1667_v26, %v1666_v47 }
 0x1e7   :  { %v1472_v9 = vrot.slane %v1471_v34, 4  ;;  %v1670_v33 = vadd.f32 %v1669_v1, %v1668_v36 }
 0x1e9   :  { %v1473_v53 = vadd.f32 %v1472_v9, %v1471_v34  ;;  %v1671_v37 = vrot.slane %v1670_v33, 4 }
 0x1eb   :  { %v1474_v15 = vrot.slane %v1473_v53, 2  ;;  %v1672_v28 = vadd.f32 %v1671_v37, %v1670_v33 }
 0x1ed   :  { %v1475_v27 = vadd.f32 %v1474_v15, %v1473_v53  ;;  %v1673_v29 = vrot.slane %v1672_v28, 2 }
 0x1ef   :  { %v1476_v38 = vrot.slane %v1475_v27, 1  ;;  %v1674_v40 = vadd.f32 %v1673_v29, %v1672_v28 }
 0x1f1   :  { %v1477_v42 = vadd.f32 %v1476_v38, %v1475_v27  ;;  %v1675_v46 = vrot.slane %v1674_v40, 1 }
 0x1f3   :  { %1479 = vst.msk [vmem:[#allocation3] sm:$0x1] %vm1478_vm5, %v1477_v42  ;;  %v1676_v41 = vadd.f32 %v1675_v46, %v1674_v40 }
 0x1f4   :  { %1690 = dma.vmem_to_hbm [thread:$0]  %s1686_s12, 16, %s1688_s15, [#allocation4]  }
 0x1f5   :  { %1677 = vst.msk [vmem:[#allocation5] sm:$0x1] %vm1478_vm5, %v1676_v41 }
 0x1f6   :  { %1701 = dma.vmem_to_hbm [thread:$0]  %s1697_s17, 16, %s1699_s20, [#allocation6]  }
 0x1f7   :  { %2179 = dma.done.wait [#allocation4], 16  }
 0x1f8   :  { %2180 = vsyncadd [#allocation4], 4294967280 }
 0x1f9   :  { %2181 = dma.done.wait [#allocation6], 16  }
 0x1fa   :  { %2182 = vsyncadd [#allocation6], 4294967280 }
 0x1fb   :  { %1712 = vsyncpa [#allocation4], 1 }
 0x1fc   :  { %1713 = vsyncpa [#allocation6], 1 }

</bundles_post_ra>
